<compile_context>
chip_gen: v5e
topology: v5e:2x2
jax: 0.10.0
libtpu: 0.0.40
codegen_flags: <defaults>
</compile_context>

<pallas_src>
import functools
import math

import jax
import jax.numpy as jnp
from jax.experimental import pallas as pl
from jax.experimental.pallas import tpu as pltpu  # noqa: F401  (kept for parity / future scratch)


# ------------------------------ helpers (in-kernel) --------------------------

def _sigmoid(x):
    # sigmoid(x) = (1 + tanh(x/2)) / 2 : one EUP pass, no divide.
    return 0.5 * (jnp.tanh(0.5 * x) + 1.0)


def _layernorm(x, gamma, beta, eps=1e-12):
    mu = jnp.mean(x, axis=-1, keepdims=True)
    var = jnp.mean(jnp.square(x - mu), axis=-1, keepdims=True)
    return (x - mu) * jax.lax.rsqrt(var + eps) * gamma + beta


# ------------------------------ fused kernel ---------------------------------

def rnnattn_kernel(B, S, NH, DH, NL, n_cont,
                   xcate_ref, cont_ref, mask_ref, w128_ref, w32_ref, out_ref):
    f32 = jnp.float32
    H = NH * DH
    G = 4 * H
    M = B * S
    lrows = ((2 * H + 1 + 7) // 8) * 8          # per-layer row block in slab128

    # ---- comb projection (cate path already folded into the embedding tables)
    wfn = w32_ref[10:10 + n_cont, :]            # [n_cont, H]
    x = (xcate_ref[...]
         + jnp.dot(cont_ref[...], wfn, preferred_element_type=f32)
         + w32_ref[0:1, :])                     # [M, H], rows are time-major

    # ---- LSTM (batch_first, zero init h/c).  Time loop fully unrolled. ------
    for layer in range(NL):
        base = layer * lrows
        wih = w128_ref[base:base + H, :]                       # [H, 4H]
        whh = w128_ref[base + H:base + 2 * H, :]               # [H, 4H]
        bl = w128_ref[base + 2 * H:base + 2 * H + 1, :]        # [1, 4H]
        # Input projection hoisted out of the recurrence: one MXU push for all
        # timesteps (gate order i, f, g, o as in PyTorch).
        gx = jnp.dot(x, wih, preferred_element_type=f32) + bl  # [M, 4H] time-major
        h = jnp.zeros((B, H), f32)
        c = jnp.zeros((B, H), f32)
        hs = []
        for t in range(S):                                     # S static
            # TODO(synk): benchmark a VPU broadcast-mul + sublane-reduce path
            # for this 2-row, k=H recurrent matmul against the MXU push.
            gates = (gx[t * B:(t + 1) * B, :]
                     + jnp.dot(h, whh, preferred_element_type=f32))   # [B, 4H]
            sig = _sigmoid(gates)                              # one EUP pass (full vreg)
            tnh = jnp.tanh(gates)                              # one EUP pass (full vreg)
            i_g = sig[:, 0 * H:1 * H]
            f_g = sig[:, 1 * H:2 * H]
            g_g = tnh[:, 2 * H:3 * H]
            o_g = sig[:, 3 * H:4 * H]
            c = f_g * c + i_g * g_g
            h = o_g * jnp.tanh(c)
            hs.append(h)
        if layer + 1 < NL:
            # next LSTM layer consumes time-major rows
            x = jnp.concatenate([ht.reshape(1, B, H) for ht in hs], axis=0).reshape(M, H)
        else:
            # attention consumes batch-major rows
            x = jnp.concatenate([ht.reshape(B, 1, H) for ht in hs], axis=1).reshape(M, H)

    # ---- BertLayer (num_hidden_layers=1): self-attention + add&norm, FFN ----
    qrow = NL * lrows
    wqkv = w128_ref[qrow:qrow + H, :]                          # [H, 4H]; lanes 3H: are 0
    bqkv = w128_ref[qrow + H:qrow + H + 1, :]                  # [1, 4H]
    qkv = jnp.dot(x, wqkv, preferred_element_type=f32) + bqkv  # [M, 4H] (1 lane-dense push)

    mask_add = mask_ref[...]                                   # [B, 1, S] additive
    scale = 1.0 / math.sqrt(DH)
    ctxs = []
    for hd in range(NH):
        q_h = qkv[:, 0 * H + hd * DH:0 * H + (hd + 1) * DH].reshape(B, S, DH)
        k_h = qkv[:, 1 * H + hd * DH:1 * H + (hd + 1) * DH].reshape(B, S, DH)
        v_h = qkv[:, 2 * H + hd * DH:2 * H + (hd + 1) * DH].reshape(B, S, DH)
        s = (jnp.einsum('bqd,bkd->bqk', q_h, k_h, preferred_element_type=f32) * scale
             + mask_add)
        s = s - jnp.max(s, axis=-1, keepdims=True)
        p = jnp.exp(s)
        p = p / jnp.sum(p, axis=-1, keepdims=True)             # exact softmax
        ctxs.append(jnp.einsum('bqk,bkd->bqd', p, v_h,
                               preferred_element_type=f32).reshape(M, DH))
    ctx = jnp.concatenate(ctxs, axis=-1)                       # [M, H]

    wo = w32_ref[16:16 + H, :]
    attn_out = jnp.dot(ctx, wo, preferred_element_type=f32) + w32_ref[1:2, :]
    x1 = _layernorm(attn_out + x, w32_ref[2:3, :], w32_ref[3:4, :])

    wi = w32_ref[16 + H:16 + 2 * H, :]
    inter = jnp.dot(x1, wi, preferred_element_type=f32) + w32_ref[4:5, :]
    # TODO(synk): HF BERT default hidden_act is exact erf-GELU; tanh approx used.
    inter = jax.nn.gelu(inter, approximate=True)
    wo2 = w32_ref[16 + 2 * H:16 + 3 * H, :]
    ffn = jnp.dot(inter, wo2, preferred_element_type=f32) + w32_ref[5:6, :]
    x2 = _layernorm(ffn + x1, w32_ref[6:7, :], w32_ref[7:8, :])

    # ---- regression head (folded host-side): VPU multiply + one lane reduce -
    rw_row = w32_ref[8:9, :]                                   # folded [1, H] weight
    rb_row = w32_ref[9:10, :]                                  # every lane = rb / H
    logit = jnp.sum((x2 * rw_row + rb_row).reshape(B, S, H), axis=-1)  # [B, S]
    out_ref[...] = _sigmoid(logit)                             # lane-layout: [B, S]


# ------------------------------ host-side weight folding / packing ------------

def fold_params(raw, *, n_heads, emb_dim):
    """Exact, one-time algebraic folds + packing into two contiguous VMEM slabs."""
    f32 = jnp.float32
    H = raw['cate_proj_w'].shape[1]
    G = 4 * H
    n_cont = raw['cont_proj_w'].shape[0]

    # comb projection fold (exact: no nonlinearity between cate/cont proj and comb proj)
    W_fc = raw['cate_proj_w'] @ raw['comb_proj_w_cate']            # [n_cate*emb, H]
    W_fn = raw['cont_proj_w'] @ raw['comb_proj_w_cont']            # [n_cont, H]
    b_f = (raw['cate_proj_b'] @ raw['comb_proj_w_cate']
           + raw['cont_proj_b'] @ raw['comb_proj_w_cont']
           + raw['comb_proj_b'])                                   # [1, H]
    emb_folded = [tbl @ W_fc[i * emb_dim:(i + 1) * emb_dim, :]
                  for i, tbl in enumerate(raw['emb_tables'])]      # lookup -> [., H]

    # regression head fold (exact: only Dropout between the Linears -> identity)
    rw = raw['reg_w1'] @ raw['reg_w2'] @ raw['reg_w3']             # [H, 1]
    rb = (raw['reg_b1'] @ raw['reg_w2'] @ raw['reg_w3']
          + raw['reg_b2'] @ raw['reg_w3'] + raw['reg_b3'])         # [1, 1]

    # ---- slab128: per-layer [wih; whh; b; pad] blocks, then fused QKV --------
    lrows = ((2 * H + 1 + 7) // 8) * 8
    rows128 = []
    for (wih, whh, bl) in raw['lstm_layers']:
        rows128 += [wih, whh, bl, jnp.zeros((lrows - 2 * H - 1, G), f32)]
    wqkv = jnp.concatenate([raw['wq'], raw['wk'], raw['wv']], axis=1)   # [H, 3H]
    bqkv = jnp.concatenate([raw['bq'], raw['bk'], raw['bv']], axis=1)   # [1, 3H]
    rows128 += [jnp.pad(wqkv, ((0, 0), (0, G - 3 * H))),
                jnp.pad(bqkv, ((0, 0), (0, G - 3 * H)))]
    slab128 = jnp.concatenate(rows128, axis=0).astype(f32)

    # ---- slab32: all H-wide vectors / matrices -------------------------------
    assert 10 + n_cont <= 16, "vector block of slab32 overflows"
    vec_rows = [b_f, raw['bo'], raw['ln1_g'], raw['ln1_b'],
                raw['bi'], raw['bo2'], raw['ln2_g'], raw['ln2_b'],
                rw.T,                                              # row 8: folded reg weight
                jnp.full((1, H), rb[0, 0] / H, f32),               # row 9: rb/H (added pre-reduce)
                W_fn,                                              # rows 10:10+n_cont
                jnp.zeros((16 - 10 - n_cont, H), f32)]
    slab32 = jnp.concatenate(vec_rows + [raw['wo'], raw['wi'], raw['wo2']],
                             axis=0).astype(f32)

    return dict(emb_tables=emb_folded, slab128=slab128, slab32=slab32)


# ------------------------------ forward wrapper --------------------------------

def rnnattn_forward(cate_ids, cont_x, mask, fp, *, n_heads, n_layers):
    B, S = mask.shape
    H = fp['slab32'].shape[1]
    DH = H // n_heads
    n_cont = cont_x.shape[-1]
    M = B * S

    # Embedding gathers (data-dependent -> plain JAX glue); cate_proj and the
    # cate half of comb_proj are already folded into the tables.  Rows are
    # emitted TIME-MAJOR (s*B + b) so the in-kernel recurrence reads contiguous
    # [B, 4H] gate slabs.
    x_cate = sum(jnp.take(tbl, ids.T, axis=0)
                 for tbl, ids in zip(fp['emb_tables'], cate_ids))
    x_cate = x_cate.reshape(M, H).astype(jnp.float32)
    cont_tm = jnp.transpose(cont_x, (1, 0, 2)).reshape(M, n_cont).astype(jnp.float32)
    # extended_attention_mask = (1 - mask) * -10000 -> [B, 1, S] additive.
    ext_mask = ((1.0 - mask.astype(jnp.float32)) * -10000.0).reshape(B, 1, S)

    args = (x_cate, cont_tm, ext_mask, fp['slab128'], fp['slab32'])

    # Advisory cost estimate so XLA schedules the surrounding glue sensibly.
    mm = lambda m, k, n: 2 * m * k * n
    flops = (mm(M, n_cont, H)
             + n_layers * (mm(M, H, 4 * H) + S * mm(B, H, 4 * H))
             + mm(M, H, 4 * H)                       # fused QKV (padded to 4H lanes)
             + n_heads * 2 * mm(B * S, DH, S)        # scores + context
             + 3 * mm(M, H, H)                       # wo, wi, wo2
             + 2 * M * H)                            # folded reg head
    transc = n_layers * S * B * (2 * 4 * H + H) + B * n_heads * S * S + M * H + M
    nbytes = 4 * (sum(int(a.size) for a in args) + B * S)

    kernel = functools.partial(rnnattn_kernel, B, S, n_heads, DH, n_layers, n_cont)
    # Single invocation, no grid: total resident data is tens of KB on all of
    # v5e/v6e/v7x, so the wins are DMA count and serial latency, not tiling.
    return pl.pallas_call(
        kernel,
        out_shape=jax.ShapeDtypeStruct((B, S), jnp.float32),
        cost_estimate=pl.CostEstimate(flops=flops, transcendentals=transc,
                                      bytes_accessed=nbytes),
    )(*args)


# ------------------------------ main -------------------------------------------

if __name__ == "__main__":
    B, S, H = 2, 8, 32
    NH, NL = 4, 1
    n_cate, n_cont = 2, 3
    num_emb = 10
    emb_dim = H // 3                                               # 10

    key = jax.random.PRNGKey(0)
    keys = iter(jax.random.split(key, 64))

    def rnd(shape, scale=0.05):
        return (scale * jax.random.normal(next(keys), shape)).astype(jnp.float32)

    raw_params = dict(
        emb_tables=[rnd((num_emb + 1, emb_dim)) for _ in range(n_cate)],
        cate_proj_w=rnd((n_cate * emb_dim, H)), cate_proj_b=rnd((1, H)),
        cont_proj_w=rnd((n_cont, H)), cont_proj_b=rnd((1, H)),
        comb_proj_w_cate=rnd((H, H)), comb_proj_w_cont=rnd((H, H)),
        comb_proj_b=rnd((1, H)),
        # LSTM weights pre-transposed [in, 4H] (gate order i,f,g,o); bias = b_ih + b_hh.
        lstm_layers=[(rnd((H, 4 * H)), rnd((H, 4 * H)), rnd((1, 4 * H)))
                     for _ in range(NL)],
        wq=rnd((H, H)), bq=rnd((1, H)),
        wk=rnd((H, H)), bk=rnd((1, H)),
        wv=rnd((H, H)), bv=rnd((1, H)),
        wo=rnd((H, H)), bo=rnd((1, H)),
        ln1_g=jnp.ones((1, H), jnp.float32), ln1_b=jnp.zeros((1, H), jnp.float32),
        wi=rnd((H, H)), bi=rnd((1, H)),
        wo2=rnd((H, H)), bo2=rnd((1, H)),
        ln2_g=jnp.ones((1, H), jnp.float32), ln2_b=jnp.zeros((1, H), jnp.float32),
        reg_w1=rnd((H, H)), reg_b1=rnd((1, H)),
        reg_w2=rnd((H, H)), reg_b2=rnd((1, H)),
        reg_w3=rnd((H, 1)), reg_b3=rnd((1, 1)),
    )
    folded = fold_params(raw_params, n_heads=NH, emb_dim=emb_dim)

    cate_ids = [jax.random.randint(next(keys), (B, S), 0, num_emb + 1)
                for _ in range(n_cate)]
    cont_x = jax.random.normal(next(keys), (B, S, n_cont), dtype=jnp.float32)
    lens = jnp.array([S, S - 3], jnp.int32)
    mask = (jnp.arange(S)[None, :] < lens[:, None]).astype(jnp.float32)

    forward = jax.jit(functools.partial(rnnattn_forward, n_heads=NH, n_layers=NL))
    preds = forward(cate_ids, cont_x, mask, folded)
    preds = jax.block_until_ready(preds)

    assert preds.shape == (B, S), preds.shape
    assert bool(jnp.all(jnp.isfinite(preds)))
    assert bool(jnp.all((preds > 0.0) & (preds < 1.0)))
    print("KERNEL_OK")
</pallas_src>

<mosaic_0001>
module attributes {stable_mosaic.version = 11 : i64} {
  func.func @rnnattn_kernel(%arg0: memref<16x32xf32, #tpu.memory_space<vmem>>, %arg1: memref<16x3xf32, #tpu.memory_space<vmem>>, %arg2: memref<2x1x8xf32, #tpu.memory_space<vmem>>, %arg3: memref<105x128xf32, #tpu.memory_space<vmem>>, %arg4: memref<112x32xf32, #tpu.memory_space<vmem>>, %arg5: memref<2x8xf32, #tpu.memory_space<vmem>>) attributes {dimension_semantics = [], scalar_prefetch = 0 : i64, scratch_operands = 0 : i64, tpu.core_type = #tpu.core_type<tc>} {
    %c10 = arith.constant 10 : index
    %c0 = arith.constant 0 : index
    %0 = vector.load %arg4[%c10, %c0] : memref<112x32xf32, #tpu.memory_space<vmem>>, vector<3x32xf32>
    %c0_0 = arith.constant 0 : index
    %c0_1 = arith.constant 0 : index
    %1 = vector.load %arg0[%c0_0, %c0_1] : memref<16x32xf32, #tpu.memory_space<vmem>>, vector<16x32xf32>
    %c0_2 = arith.constant 0 : index
    %c0_3 = arith.constant 0 : index
    %2 = vector.load %arg1[%c0_2, %c0_3] : memref<16x3xf32, #tpu.memory_space<vmem>>, vector<16x3xf32>
    %cst = arith.constant dense<0.000000e+00> : vector<16x32xf32>
    %3 = tpu.matmul %2, %0, %cst {dimension_numbers = #tpu.dot_dimension_numbers<[1], [0], [0], [1], [0, 0, 1, 1], [], []>} : vector<16x3xf32>, vector<3x32xf32>, vector<16x32xf32> -> vector<16x32xf32>
    %4 = arith.addf %1, %3 : vector<16x32xf32>
    %c0_4 = arith.constant 0 : index
    %c0_5 = arith.constant 0 : index
    %5 = vector.load %arg4[%c0_4, %c0_5] : memref<112x32xf32, #tpu.memory_space<vmem>>, vector<1x32xf32>
    %6 = vector.broadcast %5 : vector<1x32xf32> to vector<16x32xf32>
    %7 = arith.addf %4, %6 : vector<16x32xf32>
    %c0_6 = arith.constant 0 : index
    %c0_7 = arith.constant 0 : index
    %8 = vector.load %arg3[%c0_6, %c0_7] : memref<105x128xf32, #tpu.memory_space<vmem>>, vector<32x128xf32>
    %c32 = arith.constant 32 : index
    %c0_8 = arith.constant 0 : index
    %9 = vector.load %arg3[%c32, %c0_8] : memref<105x128xf32, #tpu.memory_space<vmem>>, vector<32x128xf32>
    %c64 = arith.constant 64 : index
    %c0_9 = arith.constant 0 : index
    %10 = vector.load %arg3[%c64, %c0_9] : memref<105x128xf32, #tpu.memory_space<vmem>>, vector<1x128xf32>
    %cst_10 = arith.constant dense<0.000000e+00> : vector<16x128xf32>
    %11 = tpu.matmul %7, %8, %cst_10 {dimension_numbers = #tpu.dot_dimension_numbers<[1], [0], [0], [1], [0, 0, 1, 1], [], []>} : vector<16x32xf32>, vector<32x128xf32>, vector<16x128xf32> -> vector<16x128xf32>
    %12 = vector.broadcast %10 : vector<1x128xf32> to vector<16x128xf32>
    %13 = arith.addf %11, %12 : vector<16x128xf32>
    %cst_11 = arith.constant 0.000000e+00 : f32
    %14 = vector.broadcast %cst_11 : f32 to vector<2x32xf32>
    %cst_12 = arith.constant 0.000000e+00 : f32
    %15 = vector.broadcast %cst_12 : f32 to vector<2x32xf32>
    %16 = vector.extract_strided_slice %13 {offsets = [0, 0], sizes = [2, 128], strides = [1, 1]} : vector<16x128xf32> to vector<2x128xf32>
    %cst_13 = arith.constant dense<0.000000e+00> : vector<2x128xf32>
    %17 = tpu.matmul %14, %9, %cst_13 {dimension_numbers = #tpu.dot_dimension_numbers<[1], [0], [0], [1], [0, 0, 1, 1], [], []>} : vector<2x32xf32>, vector<32x128xf32>, vector<2x128xf32> -> vector<2x128xf32>
    %18 = arith.addf %16, %17 : vector<2x128xf32>
    %cst_14 = arith.constant 5.000000e-01 : f32
    %19 = vector.broadcast %cst_14 : f32 to vector<2x128xf32>
    %20 = arith.mulf %19, %18 : vector<2x128xf32>
    %21 = math.tanh %20 : vector<2x128xf32>
    %cst_15 = arith.constant 1.000000e+00 : f32
    %22 = vector.broadcast %cst_15 : f32 to vector<2x128xf32>
    %23 = arith.addf %21, %22 : vector<2x128xf32>
    %cst_16 = arith.constant 5.000000e-01 : f32
    %24 = vector.broadcast %cst_16 : f32 to vector<2x128xf32>
    %25 = arith.mulf %24, %23 : vector<2x128xf32>
    %26 = math.tanh %18 : vector<2x128xf32>
    %27 = vector.extract_strided_slice %25 {offsets = [0, 0], sizes = [2, 32], strides = [1, 1]} : vector<2x128xf32> to vector<2x32xf32>
    %28 = vector.extract_strided_slice %25 {offsets = [0, 32], sizes = [2, 32], strides = [1, 1]} : vector<2x128xf32> to vector<2x32xf32>
    %29 = vector.extract_strided_slice %26 {offsets = [0, 64], sizes = [2, 32], strides = [1, 1]} : vector<2x128xf32> to vector<2x32xf32>
    %30 = vector.extract_strided_slice %25 {offsets = [0, 96], sizes = [2, 32], strides = [1, 1]} : vector<2x128xf32> to vector<2x32xf32>
    %31 = arith.mulf %28, %15 : vector<2x32xf32>
    %32 = arith.mulf %27, %29 : vector<2x32xf32>
    %33 = arith.addf %31, %32 : vector<2x32xf32>
    %34 = math.tanh %33 : vector<2x32xf32>
    %35 = arith.mulf %30, %34 : vector<2x32xf32>
    %36 = vector.extract_strided_slice %13 {offsets = [2, 0], sizes = [2, 128], strides = [1, 1]} : vector<16x128xf32> to vector<2x128xf32>
    %cst_17 = arith.constant dense<0.000000e+00> : vector<2x128xf32>
    %37 = tpu.matmul %35, %9, %cst_17 {dimension_numbers = #tpu.dot_dimension_numbers<[1], [0], [0], [1], [0, 0, 1, 1], [], []>} : vector<2x32xf32>, vector<32x128xf32>, vector<2x128xf32> -> vector<2x128xf32>
    %38 = arith.addf %36, %37 : vector<2x128xf32>
    %cst_18 = arith.constant 5.000000e-01 : f32
    %39 = vector.broadcast %cst_18 : f32 to vector<2x128xf32>
    %40 = arith.mulf %39, %38 : vector<2x128xf32>
    %41 = math.tanh %40 : vector<2x128xf32>
    %cst_19 = arith.constant 1.000000e+00 : f32
    %42 = vector.broadcast %cst_19 : f32 to vector<2x128xf32>
    %43 = arith.addf %41, %42 : vector<2x128xf32>
    %cst_20 = arith.constant 5.000000e-01 : f32
    %44 = vector.broadcast %cst_20 : f32 to vector<2x128xf32>
    %45 = arith.mulf %44, %43 : vector<2x128xf32>
    %46 = math.tanh %38 : vector<2x128xf32>
    %47 = vector.extract_strided_slice %45 {offsets = [0, 0], sizes = [2, 32], strides = [1, 1]} : vector<2x128xf32> to vector<2x32xf32>
    %48 = vector.extract_strided_slice %45 {offsets = [0, 32], sizes = [2, 32], strides = [1, 1]} : vector<2x128xf32> to vector<2x32xf32>
    %49 = vector.extract_strided_slice %46 {offsets = [0, 64], sizes = [2, 32], strides = [1, 1]} : vector<2x128xf32> to vector<2x32xf32>
    %50 = vector.extract_strided_slice %45 {offsets = [0, 96], sizes = [2, 32], strides = [1, 1]} : vector<2x128xf32> to vector<2x32xf32>
    %51 = arith.mulf %48, %33 : vector<2x32xf32>
    %52 = arith.mulf %47, %49 : vector<2x32xf32>
    %53 = arith.addf %51, %52 : vector<2x32xf32>
    %54 = math.tanh %53 : vector<2x32xf32>
    %55 = arith.mulf %50, %54 : vector<2x32xf32>
    %56 = vector.extract_strided_slice %13 {offsets = [4, 0], sizes = [2, 128], strides = [1, 1]} : vector<16x128xf32> to vector<2x128xf32>
    %cst_21 = arith.constant dense<0.000000e+00> : vector<2x128xf32>
    %57 = tpu.matmul %55, %9, %cst_21 {dimension_numbers = #tpu.dot_dimension_numbers<[1], [0], [0], [1], [0, 0, 1, 1], [], []>} : vector<2x32xf32>, vector<32x128xf32>, vector<2x128xf32> -> vector<2x128xf32>
    %58 = arith.addf %56, %57 : vector<2x128xf32>
    %cst_22 = arith.constant 5.000000e-01 : f32
    %59 = vector.broadcast %cst_22 : f32 to vector<2x128xf32>
    %60 = arith.mulf %59, %58 : vector<2x128xf32>
    %61 = math.tanh %60 : vector<2x128xf32>
    %cst_23 = arith.constant 1.000000e+00 : f32
    %62 = vector.broadcast %cst_23 : f32 to vector<2x128xf32>
    %63 = arith.addf %61, %62 : vector<2x128xf32>
    %cst_24 = arith.constant 5.000000e-01 : f32
    %64 = vector.broadcast %cst_24 : f32 to vector<2x128xf32>
    %65 = arith.mulf %64, %63 : vector<2x128xf32>
    %66 = math.tanh %58 : vector<2x128xf32>
    %67 = vector.extract_strided_slice %65 {offsets = [0, 0], sizes = [2, 32], strides = [1, 1]} : vector<2x128xf32> to vector<2x32xf32>
    %68 = vector.extract_strided_slice %65 {offsets = [0, 32], sizes = [2, 32], strides = [1, 1]} : vector<2x128xf32> to vector<2x32xf32>
    %69 = vector.extract_strided_slice %66 {offsets = [0, 64], sizes = [2, 32], strides = [1, 1]} : vector<2x128xf32> to vector<2x32xf32>
    %70 = vector.extract_strided_slice %65 {offsets = [0, 96], sizes = [2, 32], strides = [1, 1]} : vector<2x128xf32> to vector<2x32xf32>
    %71 = arith.mulf %68, %53 : vector<2x32xf32>
    %72 = arith.mulf %67, %69 : vector<2x32xf32>
    %73 = arith.addf %71, %72 : vector<2x32xf32>
    %74 = math.tanh %73 : vector<2x32xf32>
    %75 = arith.mulf %70, %74 : vector<2x32xf32>
    %76 = vector.extract_strided_slice %13 {offsets = [6, 0], sizes = [2, 128], strides = [1, 1]} : vector<16x128xf32> to vector<2x128xf32>
    %cst_25 = arith.constant dense<0.000000e+00> : vector<2x128xf32>
    %77 = tpu.matmul %75, %9, %cst_25 {dimension_numbers = #tpu.dot_dimension_numbers<[1], [0], [0], [1], [0, 0, 1, 1], [], []>} : vector<2x32xf32>, vector<32x128xf32>, vector<2x128xf32> -> vector<2x128xf32>
    %78 = arith.addf %76, %77 : vector<2x128xf32>
    %cst_26 = arith.constant 5.000000e-01 : f32
    %79 = vector.broadcast %cst_26 : f32 to vector<2x128xf32>
    %80 = arith.mulf %79, %78 : vector<2x128xf32>
    %81 = math.tanh %80 : vector<2x128xf32>
    %cst_27 = arith.constant 1.000000e+00 : f32
    %82 = vector.broadcast %cst_27 : f32 to vector<2x128xf32>
    %83 = arith.addf %81, %82 : vector<2x128xf32>
    %cst_28 = arith.constant 5.000000e-01 : f32
    %84 = vector.broadcast %cst_28 : f32 to vector<2x128xf32>
    %85 = arith.mulf %84, %83 : vector<2x128xf32>
    %86 = math.tanh %78 : vector<2x128xf32>
    %87 = vector.extract_strided_slice %85 {offsets = [0, 0], sizes = [2, 32], strides = [1, 1]} : vector<2x128xf32> to vector<2x32xf32>
    %88 = vector.extract_strided_slice %85 {offsets = [0, 32], sizes = [2, 32], strides = [1, 1]} : vector<2x128xf32> to vector<2x32xf32>
    %89 = vector.extract_strided_slice %86 {offsets = [0, 64], sizes = [2, 32], strides = [1, 1]} : vector<2x128xf32> to vector<2x32xf32>
    %90 = vector.extract_strided_slice %85 {offsets = [0, 96], sizes = [2, 32], strides = [1, 1]} : vector<2x128xf32> to vector<2x32xf32>
    %91 = arith.mulf %88, %73 : vector<2x32xf32>
    %92 = arith.mulf %87, %89 : vector<2x32xf32>
    %93 = arith.addf %91, %92 : vector<2x32xf32>
    %94 = math.tanh %93 : vector<2x32xf32>
    %95 = arith.mulf %90, %94 : vector<2x32xf32>
    %96 = vector.extract_strided_slice %13 {offsets = [8, 0], sizes = [2, 128], strides = [1, 1]} : vector<16x128xf32> to vector<2x128xf32>
    %cst_29 = arith.constant dense<0.000000e+00> : vector<2x128xf32>
    %97 = tpu.matmul %95, %9, %cst_29 {dimension_numbers = #tpu.dot_dimension_numbers<[1], [0], [0], [1], [0, 0, 1, 1], [], []>} : vector<2x32xf32>, vector<32x128xf32>, vector<2x128xf32> -> vector<2x128xf32>
    %98 = arith.addf %96, %97 : vector<2x128xf32>
    %cst_30 = arith.constant 5.000000e-01 : f32
    %99 = vector.broadcast %cst_30 : f32 to vector<2x128xf32>
    %100 = arith.mulf %99, %98 : vector<2x128xf32>
    %101 = math.tanh %100 : vector<2x128xf32>
    %cst_31 = arith.constant 1.000000e+00 : f32
    %102 = vector.broadcast %cst_31 : f32 to vector<2x128xf32>
    %103 = arith.addf %101, %102 : vector<2x128xf32>
    %cst_32 = arith.constant 5.000000e-01 : f32
    %104 = vector.broadcast %cst_32 : f32 to vector<2x128xf32>
    %105 = arith.mulf %104, %103 : vector<2x128xf32>
    %106 = math.tanh %98 : vector<2x128xf32>
    %107 = vector.extract_strided_slice %105 {offsets = [0, 0], sizes = [2, 32], strides = [1, 1]} : vector<2x128xf32> to vector<2x32xf32>
    %108 = vector.extract_strided_slice %105 {offsets = [0, 32], sizes = [2, 32], strides = [1, 1]} : vector<2x128xf32> to vector<2x32xf32>
    %109 = vector.extract_strided_slice %106 {offsets = [0, 64], sizes = [2, 32], strides = [1, 1]} : vector<2x128xf32> to vector<2x32xf32>
    %110 = vector.extract_strided_slice %105 {offsets = [0, 96], sizes = [2, 32], strides = [1, 1]} : vector<2x128xf32> to vector<2x32xf32>
    %111 = arith.mulf %108, %93 : vector<2x32xf32>
    %112 = arith.mulf %107, %109 : vector<2x32xf32>
    %113 = arith.addf %111, %112 : vector<2x32xf32>
    %114 = math.tanh %113 : vector<2x32xf32>
    %115 = arith.mulf %110, %114 : vector<2x32xf32>
    %116 = vector.extract_strided_slice %13 {offsets = [10, 0], sizes = [2, 128], strides = [1, 1]} : vector<16x128xf32> to vector<2x128xf32>
    %cst_33 = arith.constant dense<0.000000e+00> : vector<2x128xf32>
    %117 = tpu.matmul %115, %9, %cst_33 {dimension_numbers = #tpu.dot_dimension_numbers<[1], [0], [0], [1], [0, 0, 1, 1], [], []>} : vector<2x32xf32>, vector<32x128xf32>, vector<2x128xf32> -> vector<2x128xf32>
    %118 = arith.addf %116, %117 : vector<2x128xf32>
    %cst_34 = arith.constant 5.000000e-01 : f32
    %119 = vector.broadcast %cst_34 : f32 to vector<2x128xf32>
    %120 = arith.mulf %119, %118 : vector<2x128xf32>
    %121 = math.tanh %120 : vector<2x128xf32>
    %cst_35 = arith.constant 1.000000e+00 : f32
    %122 = vector.broadcast %cst_35 : f32 to vector<2x128xf32>
    %123 = arith.addf %121, %122 : vector<2x128xf32>
    %cst_36 = arith.constant 5.000000e-01 : f32
    %124 = vector.broadcast %cst_36 : f32 to vector<2x128xf32>
    %125 = arith.mulf %124, %123 : vector<2x128xf32>
    %126 = math.tanh %118 : vector<2x128xf32>
    %127 = vector.extract_strided_slice %125 {offsets = [0, 0], sizes = [2, 32], strides = [1, 1]} : vector<2x128xf32> to vector<2x32xf32>
    %128 = vector.extract_strided_slice %125 {offsets = [0, 32], sizes = [2, 32], strides = [1, 1]} : vector<2x128xf32> to vector<2x32xf32>
    %129 = vector.extract_strided_slice %126 {offsets = [0, 64], sizes = [2, 32], strides = [1, 1]} : vector<2x128xf32> to vector<2x32xf32>
    %130 = vector.extract_strided_slice %125 {offsets = [0, 96], sizes = [2, 32], strides = [1, 1]} : vector<2x128xf32> to vector<2x32xf32>
    %131 = arith.mulf %128, %113 : vector<2x32xf32>
    %132 = arith.mulf %127, %129 : vector<2x32xf32>
    %133 = arith.addf %131, %132 : vector<2x32xf32>
    %134 = math.tanh %133 : vector<2x32xf32>
    %135 = arith.mulf %130, %134 : vector<2x32xf32>
    %136 = vector.extract_strided_slice %13 {offsets = [12, 0], sizes = [2, 128], strides = [1, 1]} : vector<16x128xf32> to vector<2x128xf32>
    %cst_37 = arith.constant dense<0.000000e+00> : vector<2x128xf32>
    %137 = tpu.matmul %135, %9, %cst_37 {dimension_numbers = #tpu.dot_dimension_numbers<[1], [0], [0], [1], [0, 0, 1, 1], [], []>} : vector<2x32xf32>, vector<32x128xf32>, vector<2x128xf32> -> vector<2x128xf32>
    %138 = arith.addf %136, %137 : vector<2x128xf32>
    %cst_38 = arith.constant 5.000000e-01 : f32
    %139 = vector.broadcast %cst_38 : f32 to vector<2x128xf32>
    %140 = arith.mulf %139, %138 : vector<2x128xf32>
    %141 = math.tanh %140 : vector<2x128xf32>
    %cst_39 = arith.constant 1.000000e+00 : f32
    %142 = vector.broadcast %cst_39 : f32 to vector<2x128xf32>
    %143 = arith.addf %141, %142 : vector<2x128xf32>
    %cst_40 = arith.constant 5.000000e-01 : f32
    %144 = vector.broadcast %cst_40 : f32 to vector<2x128xf32>
    %145 = arith.mulf %144, %143 : vector<2x128xf32>
    %146 = math.tanh %138 : vector<2x128xf32>
    %147 = vector.extract_strided_slice %145 {offsets = [0, 0], sizes = [2, 32], strides = [1, 1]} : vector<2x128xf32> to vector<2x32xf32>
    %148 = vector.extract_strided_slice %145 {offsets = [0, 32], sizes = [2, 32], strides = [1, 1]} : vector<2x128xf32> to vector<2x32xf32>
    %149 = vector.extract_strided_slice %146 {offsets = [0, 64], sizes = [2, 32], strides = [1, 1]} : vector<2x128xf32> to vector<2x32xf32>
    %150 = vector.extract_strided_slice %145 {offsets = [0, 96], sizes = [2, 32], strides = [1, 1]} : vector<2x128xf32> to vector<2x32xf32>
    %151 = arith.mulf %148, %133 : vector<2x32xf32>
    %152 = arith.mulf %147, %149 : vector<2x32xf32>
    %153 = arith.addf %151, %152 : vector<2x32xf32>
    %154 = math.tanh %153 : vector<2x32xf32>
    %155 = arith.mulf %150, %154 : vector<2x32xf32>
    %156 = vector.extract_strided_slice %13 {offsets = [14, 0], sizes = [2, 128], strides = [1, 1]} : vector<16x128xf32> to vector<2x128xf32>
    %cst_41 = arith.constant dense<0.000000e+00> : vector<2x128xf32>
    %157 = tpu.matmul %155, %9, %cst_41 {dimension_numbers = #tpu.dot_dimension_numbers<[1], [0], [0], [1], [0, 0, 1, 1], [], []>} : vector<2x32xf32>, vector<32x128xf32>, vector<2x128xf32> -> vector<2x128xf32>
    %158 = arith.addf %156, %157 : vector<2x128xf32>
    %cst_42 = arith.constant 5.000000e-01 : f32
    %159 = vector.broadcast %cst_42 : f32 to vector<2x128xf32>
    %160 = arith.mulf %159, %158 : vector<2x128xf32>
    %161 = math.tanh %160 : vector<2x128xf32>
    %cst_43 = arith.constant 1.000000e+00 : f32
    %162 = vector.broadcast %cst_43 : f32 to vector<2x128xf32>
    %163 = arith.addf %161, %162 : vector<2x128xf32>
    %cst_44 = arith.constant 5.000000e-01 : f32
    %164 = vector.broadcast %cst_44 : f32 to vector<2x128xf32>
    %165 = arith.mulf %164, %163 : vector<2x128xf32>
    %166 = math.tanh %158 : vector<2x128xf32>
    %167 = vector.extract_strided_slice %165 {offsets = [0, 0], sizes = [2, 32], strides = [1, 1]} : vector<2x128xf32> to vector<2x32xf32>
    %168 = vector.extract_strided_slice %165 {offsets = [0, 32], sizes = [2, 32], strides = [1, 1]} : vector<2x128xf32> to vector<2x32xf32>
    %169 = vector.extract_strided_slice %166 {offsets = [0, 64], sizes = [2, 32], strides = [1, 1]} : vector<2x128xf32> to vector<2x32xf32>
    %170 = vector.extract_strided_slice %165 {offsets = [0, 96], sizes = [2, 32], strides = [1, 1]} : vector<2x128xf32> to vector<2x32xf32>
    %171 = arith.mulf %168, %153 : vector<2x32xf32>
    %172 = arith.mulf %167, %169 : vector<2x32xf32>
    %173 = arith.addf %171, %172 : vector<2x32xf32>
    %174 = math.tanh %173 : vector<2x32xf32>
    %175 = arith.mulf %170, %174 : vector<2x32xf32>
    %176 = vector.shape_cast %35 : vector<2x32xf32> to vector<2x1x32xf32>
    %177 = vector.shape_cast %55 : vector<2x32xf32> to vector<2x1x32xf32>
    %178 = vector.shape_cast %75 : vector<2x32xf32> to vector<2x1x32xf32>
    %179 = vector.shape_cast %95 : vector<2x32xf32> to vector<2x1x32xf32>
    %180 = vector.shape_cast %115 : vector<2x32xf32> to vector<2x1x32xf32>
    %181 = vector.shape_cast %135 : vector<2x32xf32> to vector<2x1x32xf32>
    %182 = vector.shape_cast %155 : vector<2x32xf32> to vector<2x1x32xf32>
    %183 = vector.shape_cast %175 : vector<2x32xf32> to vector<2x1x32xf32>
    %184 = tpu.concatenate %176, %177, %178, %179, %180, %181, %182, %183 in 1 : vector<2x1x32xf32>, vector<2x1x32xf32>, vector<2x1x32xf32>, vector<2x1x32xf32>, vector<2x1x32xf32>, vector<2x1x32xf32>, vector<2x1x32xf32>, vector<2x1x32xf32> -> vector<2x8x32xf32>
    %185 = vector.shape_cast %184 : vector<2x8x32xf32> to vector<16x32xf32>
    %c72 = arith.constant 72 : index
    %c0_45 = arith.constant 0 : index
    %186 = vector.load %arg3[%c72, %c0_45] : memref<105x128xf32, #tpu.memory_space<vmem>>, vector<32x128xf32>
    %c104 = arith.constant 104 : index
    %c0_46 = arith.constant 0 : index
    %187 = vector.load %arg3[%c104, %c0_46] : memref<105x128xf32, #tpu.memory_space<vmem>>, vector<1x128xf32>
    %cst_47 = arith.constant dense<0.000000e+00> : vector<16x128xf32>
    %188 = tpu.matmul %185, %186, %cst_47 {dimension_numbers = #tpu.dot_dimension_numbers<[1], [0], [0], [1], [0, 0, 1, 1], [], []>} : vector<16x32xf32>, vector<32x128xf32>, vector<16x128xf32> -> vector<16x128xf32>
    %189 = vector.broadcast %187 : vector<1x128xf32> to vector<16x128xf32>
    %190 = arith.addf %188, %189 : vector<16x128xf32>
    %c0_48 = arith.constant 0 : index
    %c0_49 = arith.constant 0 : index
    %c0_50 = arith.constant 0 : index
    %191 = vector.load %arg2[%c0_48, %c0_49, %c0_50] : memref<2x1x8xf32, #tpu.memory_space<vmem>>, vector<2x1x8xf32>
    %192 = vector.extract_strided_slice %190 {offsets = [0, 0], sizes = [16, 8], strides = [1, 1]} : vector<16x128xf32> to vector<16x8xf32>
    %193 = vector.shape_cast %192 : vector<16x8xf32> to vector<2x8x8xf32>
    %194 = vector.extract_strided_slice %190 {offsets = [0, 32], sizes = [16, 8], strides = [1, 1]} : vector<16x128xf32> to vector<16x8xf32>
    %195 = vector.shape_cast %194 : vector<16x8xf32> to vector<2x8x8xf32>
    %196 = vector.extract_strided_slice %190 {offsets = [0, 64], sizes = [16, 8], strides = [1, 1]} : vector<16x128xf32> to vector<16x8xf32>
    %197 = vector.shape_cast %196 : vector<16x8xf32> to vector<2x8x8xf32>
    "tpu.trace_start"() <{level = 10 : i32, message = "bqd,bkd->bqk"}> : () -> ()
    %cst_51 = arith.constant dense<0.000000e+00> : vector<2x8x8xf32>
    %198 = tpu.matmul %193, %195, %cst_51 {dimension_numbers = #tpu.dot_dimension_numbers<[2], [2], [1], [1], [0, 0, 0, 1, 1, 1], [0], [0]>} : vector<2x8x8xf32>, vector<2x8x8xf32>, vector<2x8x8xf32> -> vector<2x8x8xf32>
    "tpu.trace_stop"() : () -> ()
    %cst_52 = arith.constant 0.353553385 : f32
    %199 = vector.broadcast %cst_52 : f32 to vector<2x8x8xf32>
    %200 = arith.mulf %198, %199 : vector<2x8x8xf32>
    %201 = vector.broadcast %191 : vector<2x1x8xf32> to vector<2x8x8xf32>
    %202 = arith.addf %200, %201 : vector<2x8x8xf32>
    %cst_53 = arith.constant dense<0xFF800000> : vector<2x8xf32>
    %203 = vector.multi_reduction <maximumf>, %202, %cst_53 [2] : vector<2x8x8xf32> to vector<2x8xf32>
    %204 = vector.shape_cast %203 : vector<2x8xf32> to vector<2x8x1xf32>
    %205 = vector.broadcast %204 : vector<2x8x1xf32> to vector<2x8x8xf32>
    %206 = arith.subf %202, %205 : vector<2x8x8xf32>
    %207 = math.exp %206 : vector<2x8x8xf32>
    %cst_54 = arith.constant dense<0.000000e+00> : vector<2x8xf32>
    %208 = vector.multi_reduction <add>, %207, %cst_54 [2] : vector<2x8x8xf32> to vector<2x8xf32>
    %209 = vector.shape_cast %208 : vector<2x8xf32> to vector<2x8x1xf32>
    %210 = vector.broadcast %209 : vector<2x8x1xf32> to vector<2x8x8xf32>
    %211 = arith.divf %207, %210 : vector<2x8x8xf32>
    "tpu.trace_start"() <{level = 10 : i32, message = "bqk,bkd->bqd"}> : () -> ()
    %cst_55 = arith.constant dense<0.000000e+00> : vector<2x8x8xf32>
    %212 = tpu.matmul %211, %197, %cst_55 {dimension_numbers = #tpu.dot_dimension_numbers<[2], [1], [1], [2], [0, 0, 0, 1, 1, 2], [0], [0]>} : vector<2x8x8xf32>, vector<2x8x8xf32>, vector<2x8x8xf32> -> vector<2x8x8xf32>
    "tpu.trace_stop"() : () -> ()
    %213 = vector.shape_cast %212 : vector<2x8x8xf32> to vector<16x8xf32>
    %214 = vector.extract_strided_slice %190 {offsets = [0, 8], sizes = [16, 8], strides = [1, 1]} : vector<16x128xf32> to vector<16x8xf32>
    %215 = vector.shape_cast %214 : vector<16x8xf32> to vector<2x8x8xf32>
    %216 = vector.extract_strided_slice %190 {offsets = [0, 40], sizes = [16, 8], strides = [1, 1]} : vector<16x128xf32> to vector<16x8xf32>
    %217 = vector.shape_cast %216 : vector<16x8xf32> to vector<2x8x8xf32>
    %218 = vector.extract_strided_slice %190 {offsets = [0, 72], sizes = [16, 8], strides = [1, 1]} : vector<16x128xf32> to vector<16x8xf32>
    %219 = vector.shape_cast %218 : vector<16x8xf32> to vector<2x8x8xf32>
    "tpu.trace_start"() <{level = 10 : i32, message = "bqd,bkd->bqk"}> : () -> ()
    %cst_56 = arith.constant dense<0.000000e+00> : vector<2x8x8xf32>
    %220 = tpu.matmul %215, %217, %cst_56 {dimension_numbers = #tpu.dot_dimension_numbers<[2], [2], [1], [1], [0, 0, 0, 1, 1, 1], [0], [0]>} : vector<2x8x8xf32>, vector<2x8x8xf32>, vector<2x8x8xf32> -> vector<2x8x8xf32>
    "tpu.trace_stop"() : () -> ()
    %cst_57 = arith.constant 0.353553385 : f32
    %221 = vector.broadcast %cst_57 : f32 to vector<2x8x8xf32>
    %222 = arith.mulf %220, %221 : vector<2x8x8xf32>
    %223 = vector.broadcast %191 : vector<2x1x8xf32> to vector<2x8x8xf32>
    %224 = arith.addf %222, %223 : vector<2x8x8xf32>
    %cst_58 = arith.constant dense<0xFF800000> : vector<2x8xf32>
    %225 = vector.multi_reduction <maximumf>, %224, %cst_58 [2] : vector<2x8x8xf32> to vector<2x8xf32>
    %226 = vector.shape_cast %225 : vector<2x8xf32> to vector<2x8x1xf32>
    %227 = vector.broadcast %226 : vector<2x8x1xf32> to vector<2x8x8xf32>
    %228 = arith.subf %224, %227 : vector<2x8x8xf32>
    %229 = math.exp %228 : vector<2x8x8xf32>
    %cst_59 = arith.constant dense<0.000000e+00> : vector<2x8xf32>
    %230 = vector.multi_reduction <add>, %229, %cst_59 [2] : vector<2x8x8xf32> to vector<2x8xf32>
    %231 = vector.shape_cast %230 : vector<2x8xf32> to vector<2x8x1xf32>
    %232 = vector.broadcast %231 : vector<2x8x1xf32> to vector<2x8x8xf32>
    %233 = arith.divf %229, %232 : vector<2x8x8xf32>
    "tpu.trace_start"() <{level = 10 : i32, message = "bqk,bkd->bqd"}> : () -> ()
    %cst_60 = arith.constant dense<0.000000e+00> : vector<2x8x8xf32>
    %234 = tpu.matmul %233, %219, %cst_60 {dimension_numbers = #tpu.dot_dimension_numbers<[2], [1], [1], [2], [0, 0, 0, 1, 1, 2], [0], [0]>} : vector<2x8x8xf32>, vector<2x8x8xf32>, vector<2x8x8xf32> -> vector<2x8x8xf32>
    "tpu.trace_stop"() : () -> ()
    %235 = vector.shape_cast %234 : vector<2x8x8xf32> to vector<16x8xf32>
    %236 = vector.extract_strided_slice %190 {offsets = [0, 16], sizes = [16, 8], strides = [1, 1]} : vector<16x128xf32> to vector<16x8xf32>
    %237 = vector.shape_cast %236 : vector<16x8xf32> to vector<2x8x8xf32>
    %238 = vector.extract_strided_slice %190 {offsets = [0, 48], sizes = [16, 8], strides = [1, 1]} : vector<16x128xf32> to vector<16x8xf32>
    %239 = vector.shape_cast %238 : vector<16x8xf32> to vector<2x8x8xf32>
    %240 = vector.extract_strided_slice %190 {offsets = [0, 80], sizes = [16, 8], strides = [1, 1]} : vector<16x128xf32> to vector<16x8xf32>
    %241 = vector.shape_cast %240 : vector<16x8xf32> to vector<2x8x8xf32>
    "tpu.trace_start"() <{level = 10 : i32, message = "bqd,bkd->bqk"}> : () -> ()
    %cst_61 = arith.constant dense<0.000000e+00> : vector<2x8x8xf32>
    %242 = tpu.matmul %237, %239, %cst_61 {dimension_numbers = #tpu.dot_dimension_numbers<[2], [2], [1], [1], [0, 0, 0, 1, 1, 1], [0], [0]>} : vector<2x8x8xf32>, vector<2x8x8xf32>, vector<2x8x8xf32> -> vector<2x8x8xf32>
    "tpu.trace_stop"() : () -> ()
    %cst_62 = arith.constant 0.353553385 : f32
    %243 = vector.broadcast %cst_62 : f32 to vector<2x8x8xf32>
    %244 = arith.mulf %242, %243 : vector<2x8x8xf32>
    %245 = vector.broadcast %191 : vector<2x1x8xf32> to vector<2x8x8xf32>
    %246 = arith.addf %244, %245 : vector<2x8x8xf32>
    %cst_63 = arith.constant dense<0xFF800000> : vector<2x8xf32>
    %247 = vector.multi_reduction <maximumf>, %246, %cst_63 [2] : vector<2x8x8xf32> to vector<2x8xf32>
    %248 = vector.shape_cast %247 : vector<2x8xf32> to vector<2x8x1xf32>
    %249 = vector.broadcast %248 : vector<2x8x1xf32> to vector<2x8x8xf32>
    %250 = arith.subf %246, %249 : vector<2x8x8xf32>
    %251 = math.exp %250 : vector<2x8x8xf32>
    %cst_64 = arith.constant dense<0.000000e+00> : vector<2x8xf32>
    %252 = vector.multi_reduction <add>, %251, %cst_64 [2] : vector<2x8x8xf32> to vector<2x8xf32>
    %253 = vector.shape_cast %252 : vector<2x8xf32> to vector<2x8x1xf32>
    %254 = vector.broadcast %253 : vector<2x8x1xf32> to vector<2x8x8xf32>
    %255 = arith.divf %251, %254 : vector<2x8x8xf32>
    "tpu.trace_start"() <{level = 10 : i32, message = "bqk,bkd->bqd"}> : () -> ()
    %cst_65 = arith.constant dense<0.000000e+00> : vector<2x8x8xf32>
    %256 = tpu.matmul %255, %241, %cst_65 {dimension_numbers = #tpu.dot_dimension_numbers<[2], [1], [1], [2], [0, 0, 0, 1, 1, 2], [0], [0]>} : vector<2x8x8xf32>, vector<2x8x8xf32>, vector<2x8x8xf32> -> vector<2x8x8xf32>
    "tpu.trace_stop"() : () -> ()
    %257 = vector.shape_cast %256 : vector<2x8x8xf32> to vector<16x8xf32>
    %258 = vector.extract_strided_slice %190 {offsets = [0, 24], sizes = [16, 8], strides = [1, 1]} : vector<16x128xf32> to vector<16x8xf32>
    %259 = vector.shape_cast %258 : vector<16x8xf32> to vector<2x8x8xf32>
    %260 = vector.extract_strided_slice %190 {offsets = [0, 56], sizes = [16, 8], strides = [1, 1]} : vector<16x128xf32> to vector<16x8xf32>
    %261 = vector.shape_cast %260 : vector<16x8xf32> to vector<2x8x8xf32>
    %262 = vector.extract_strided_slice %190 {offsets = [0, 88], sizes = [16, 8], strides = [1, 1]} : vector<16x128xf32> to vector<16x8xf32>
    %263 = vector.shape_cast %262 : vector<16x8xf32> to vector<2x8x8xf32>
    "tpu.trace_start"() <{level = 10 : i32, message = "bqd,bkd->bqk"}> : () -> ()
    %cst_66 = arith.constant dense<0.000000e+00> : vector<2x8x8xf32>
    %264 = tpu.matmul %259, %261, %cst_66 {dimension_numbers = #tpu.dot_dimension_numbers<[2], [2], [1], [1], [0, 0, 0, 1, 1, 1], [0], [0]>} : vector<2x8x8xf32>, vector<2x8x8xf32>, vector<2x8x8xf32> -> vector<2x8x8xf32>
    "tpu.trace_stop"() : () -> ()
    %cst_67 = arith.constant 0.353553385 : f32
    %265 = vector.broadcast %cst_67 : f32 to vector<2x8x8xf32>
    %266 = arith.mulf %264, %265 : vector<2x8x8xf32>
    %267 = vector.broadcast %191 : vector<2x1x8xf32> to vector<2x8x8xf32>
    %268 = arith.addf %266, %267 : vector<2x8x8xf32>
    %cst_68 = arith.constant dense<0xFF800000> : vector<2x8xf32>
    %269 = vector.multi_reduction <maximumf>, %268, %cst_68 [2] : vector<2x8x8xf32> to vector<2x8xf32>
    %270 = vector.shape_cast %269 : vector<2x8xf32> to vector<2x8x1xf32>
    %271 = vector.broadcast %270 : vector<2x8x1xf32> to vector<2x8x8xf32>
    %272 = arith.subf %268, %271 : vector<2x8x8xf32>
    %273 = math.exp %272 : vector<2x8x8xf32>
    %cst_69 = arith.constant dense<0.000000e+00> : vector<2x8xf32>
    %274 = vector.multi_reduction <add>, %273, %cst_69 [2] : vector<2x8x8xf32> to vector<2x8xf32>
    %275 = vector.shape_cast %274 : vector<2x8xf32> to vector<2x8x1xf32>
    %276 = vector.broadcast %275 : vector<2x8x1xf32> to vector<2x8x8xf32>
    %277 = arith.divf %273, %276 : vector<2x8x8xf32>
    "tpu.trace_start"() <{level = 10 : i32, message = "bqk,bkd->bqd"}> : () -> ()
    %cst_70 = arith.constant dense<0.000000e+00> : vector<2x8x8xf32>
    %278 = tpu.matmul %277, %263, %cst_70 {dimension_numbers = #tpu.dot_dimension_numbers<[2], [1], [1], [2], [0, 0, 0, 1, 1, 2], [0], [0]>} : vector<2x8x8xf32>, vector<2x8x8xf32>, vector<2x8x8xf32> -> vector<2x8x8xf32>
    "tpu.trace_stop"() : () -> ()
    %279 = vector.shape_cast %278 : vector<2x8x8xf32> to vector<16x8xf32>
    %280 = tpu.concatenate %213, %235, %257, %279 in 1 : vector<16x8xf32>, vector<16x8xf32>, vector<16x8xf32>, vector<16x8xf32> -> vector<16x32xf32>
    %c16 = arith.constant 16 : index
    %c0_71 = arith.constant 0 : index
    %281 = vector.load %arg4[%c16, %c0_71] : memref<112x32xf32, #tpu.memory_space<vmem>>, vector<32x32xf32>
    %cst_72 = arith.constant dense<0.000000e+00> : vector<16x32xf32>
    %282 = tpu.matmul %280, %281, %cst_72 {dimension_numbers = #tpu.dot_dimension_numbers<[1], [0], [0], [1], [0, 0, 1, 1], [], []>} : vector<16x32xf32>, vector<32x32xf32>, vector<16x32xf32> -> vector<16x32xf32>
    %c1 = arith.constant 1 : index
    %c0_73 = arith.constant 0 : index
    %283 = vector.load %arg4[%c1, %c0_73] : memref<112x32xf32, #tpu.memory_space<vmem>>, vector<1x32xf32>
    %284 = vector.broadcast %283 : vector<1x32xf32> to vector<16x32xf32>
    %285 = arith.addf %282, %284 : vector<16x32xf32>
    %286 = arith.addf %285, %185 : vector<16x32xf32>
    %c2 = arith.constant 2 : index
    %c0_74 = arith.constant 0 : index
    %287 = vector.load %arg4[%c2, %c0_74] : memref<112x32xf32, #tpu.memory_space<vmem>>, vector<1x32xf32>
    %c3 = arith.constant 3 : index
    %c0_75 = arith.constant 0 : index
    %288 = vector.load %arg4[%c3, %c0_75] : memref<112x32xf32, #tpu.memory_space<vmem>>, vector<1x32xf32>
    %cst_76 = arith.constant dense<0.000000e+00> : vector<16xf32>
    %289 = vector.multi_reduction <add>, %286, %cst_76 [1] : vector<16x32xf32> to vector<16xf32>
    %290 = vector.shape_cast %289 : vector<16xf32> to vector<16x1xf32>
    %cst_77 = arith.constant 3.200000e+01 : f32
    %291 = vector.broadcast %cst_77 : f32 to vector<16x1xf32>
    %292 = arith.divf %290, %291 : vector<16x1xf32>
    %293 = vector.broadcast %292 : vector<16x1xf32> to vector<16x32xf32>
    %294 = arith.subf %286, %293 : vector<16x32xf32>
    %295 = arith.mulf %294, %294 : vector<16x32xf32>
    %cst_78 = arith.constant dense<0.000000e+00> : vector<16xf32>
    %296 = vector.multi_reduction <add>, %295, %cst_78 [1] : vector<16x32xf32> to vector<16xf32>
    %297 = vector.shape_cast %296 : vector<16xf32> to vector<16x1xf32>
    %cst_79 = arith.constant 3.200000e+01 : f32
    %298 = vector.broadcast %cst_79 : f32 to vector<16x1xf32>
    %299 = arith.divf %297, %298 : vector<16x1xf32>
    %300 = vector.broadcast %292 : vector<16x1xf32> to vector<16x32xf32>
    %301 = arith.subf %286, %300 : vector<16x32xf32>
    %cst_80 = arith.constant 9.99999996E-13 : f32
    %302 = vector.broadcast %cst_80 : f32 to vector<16x1xf32>
    %303 = arith.addf %299, %302 : vector<16x1xf32>
    %304 = math.rsqrt %303 : vector<16x1xf32>
    %305 = vector.broadcast %304 : vector<16x1xf32> to vector<16x32xf32>
    %306 = arith.mulf %301, %305 : vector<16x32xf32>
    %307 = vector.broadcast %287 : vector<1x32xf32> to vector<16x32xf32>
    %308 = arith.mulf %306, %307 : vector<16x32xf32>
    %309 = vector.broadcast %288 : vector<1x32xf32> to vector<16x32xf32>
    %310 = arith.addf %308, %309 : vector<16x32xf32>
    %c48 = arith.constant 48 : index
    %c0_81 = arith.constant 0 : index
    %311 = vector.load %arg4[%c48, %c0_81] : memref<112x32xf32, #tpu.memory_space<vmem>>, vector<32x32xf32>
    %cst_82 = arith.constant dense<0.000000e+00> : vector<16x32xf32>
    %312 = tpu.matmul %310, %311, %cst_82 {dimension_numbers = #tpu.dot_dimension_numbers<[1], [0], [0], [1], [0, 0, 1, 1], [], []>} : vector<16x32xf32>, vector<32x32xf32>, vector<16x32xf32> -> vector<16x32xf32>
    %c4 = arith.constant 4 : index
    %c0_83 = arith.constant 0 : index
    %313 = vector.load %arg4[%c4, %c0_83] : memref<112x32xf32, #tpu.memory_space<vmem>>, vector<1x32xf32>
    %314 = vector.broadcast %313 : vector<1x32xf32> to vector<16x32xf32>
    %315 = arith.addf %312, %314 : vector<16x32xf32>
    %316 = arith.mulf %315, %315 : vector<16x32xf32>
    %317 = arith.mulf %315, %316 : vector<16x32xf32>
    %cst_84 = arith.constant 4.471500e-02 : f32
    %318 = vector.broadcast %cst_84 : f32 to vector<16x32xf32>
    %319 = arith.mulf %318, %317 : vector<16x32xf32>
    %320 = arith.addf %315, %319 : vector<16x32xf32>
    %cst_85 = arith.constant 0.797884583 : f32
    %321 = vector.broadcast %cst_85 : f32 to vector<16x32xf32>
    %322 = arith.mulf %321, %320 : vector<16x32xf32>
    %323 = math.tanh %322 : vector<16x32xf32>
    %cst_86 = arith.constant 1.000000e+00 : f32
    %324 = vector.broadcast %cst_86 : f32 to vector<16x32xf32>
    %325 = arith.addf %324, %323 : vector<16x32xf32>
    %cst_87 = arith.constant 5.000000e-01 : f32
    %326 = vector.broadcast %cst_87 : f32 to vector<16x32xf32>
    %327 = arith.mulf %326, %325 : vector<16x32xf32>
    %328 = arith.mulf %315, %327 : vector<16x32xf32>
    %c80 = arith.constant 80 : index
    %c0_88 = arith.constant 0 : index
    %329 = vector.load %arg4[%c80, %c0_88] : memref<112x32xf32, #tpu.memory_space<vmem>>, vector<32x32xf32>
    %cst_89 = arith.constant dense<0.000000e+00> : vector<16x32xf32>
    %330 = tpu.matmul %328, %329, %cst_89 {dimension_numbers = #tpu.dot_dimension_numbers<[1], [0], [0], [1], [0, 0, 1, 1], [], []>} : vector<16x32xf32>, vector<32x32xf32>, vector<16x32xf32> -> vector<16x32xf32>
    %c5 = arith.constant 5 : index
    %c0_90 = arith.constant 0 : index
    %331 = vector.load %arg4[%c5, %c0_90] : memref<112x32xf32, #tpu.memory_space<vmem>>, vector<1x32xf32>
    %332 = vector.broadcast %331 : vector<1x32xf32> to vector<16x32xf32>
    %333 = arith.addf %330, %332 : vector<16x32xf32>
    %334 = arith.addf %333, %310 : vector<16x32xf32>
    %c6 = arith.constant 6 : index
    %c0_91 = arith.constant 0 : index
    %335 = vector.load %arg4[%c6, %c0_91] : memref<112x32xf32, #tpu.memory_space<vmem>>, vector<1x32xf32>
    %c7 = arith.constant 7 : index
    %c0_92 = arith.constant 0 : index
    %336 = vector.load %arg4[%c7, %c0_92] : memref<112x32xf32, #tpu.memory_space<vmem>>, vector<1x32xf32>
    %cst_93 = arith.constant dense<0.000000e+00> : vector<16xf32>
    %337 = vector.multi_reduction <add>, %334, %cst_93 [1] : vector<16x32xf32> to vector<16xf32>
    %338 = vector.shape_cast %337 : vector<16xf32> to vector<16x1xf32>
    %cst_94 = arith.constant 3.200000e+01 : f32
    %339 = vector.broadcast %cst_94 : f32 to vector<16x1xf32>
    %340 = arith.divf %338, %339 : vector<16x1xf32>
    %341 = vector.broadcast %340 : vector<16x1xf32> to vector<16x32xf32>
    %342 = arith.subf %334, %341 : vector<16x32xf32>
    %343 = arith.mulf %342, %342 : vector<16x32xf32>
    %cst_95 = arith.constant dense<0.000000e+00> : vector<16xf32>
    %344 = vector.multi_reduction <add>, %343, %cst_95 [1] : vector<16x32xf32> to vector<16xf32>
    %345 = vector.shape_cast %344 : vector<16xf32> to vector<16x1xf32>
    %cst_96 = arith.constant 3.200000e+01 : f32
    %346 = vector.broadcast %cst_96 : f32 to vector<16x1xf32>
    %347 = arith.divf %345, %346 : vector<16x1xf32>
    %348 = vector.broadcast %340 : vector<16x1xf32> to vector<16x32xf32>
    %349 = arith.subf %334, %348 : vector<16x32xf32>
    %cst_97 = arith.constant 9.99999996E-13 : f32
    %350 = vector.broadcast %cst_97 : f32 to vector<16x1xf32>
    %351 = arith.addf %347, %350 : vector<16x1xf32>
    %352 = math.rsqrt %351 : vector<16x1xf32>
    %353 = vector.broadcast %352 : vector<16x1xf32> to vector<16x32xf32>
    %354 = arith.mulf %349, %353 : vector<16x32xf32>
    %355 = vector.broadcast %335 : vector<1x32xf32> to vector<16x32xf32>
    %356 = arith.mulf %354, %355 : vector<16x32xf32>
    %357 = vector.broadcast %336 : vector<1x32xf32> to vector<16x32xf32>
    %358 = arith.addf %356, %357 : vector<16x32xf32>
    %c8 = arith.constant 8 : index
    %c0_98 = arith.constant 0 : index
    %359 = vector.load %arg4[%c8, %c0_98] : memref<112x32xf32, #tpu.memory_space<vmem>>, vector<1x32xf32>
    %c9 = arith.constant 9 : index
    %c0_99 = arith.constant 0 : index
    %360 = vector.load %arg4[%c9, %c0_99] : memref<112x32xf32, #tpu.memory_space<vmem>>, vector<1x32xf32>
    %361 = vector.broadcast %359 : vector<1x32xf32> to vector<16x32xf32>
    %362 = arith.mulf %358, %361 : vector<16x32xf32>
    %363 = vector.broadcast %360 : vector<1x32xf32> to vector<16x32xf32>
    %364 = arith.addf %362, %363 : vector<16x32xf32>
    %365 = vector.shape_cast %364 : vector<16x32xf32> to vector<2x8x32xf32>
    %cst_100 = arith.constant dense<0.000000e+00> : vector<2x8xf32>
    %366 = vector.multi_reduction <add>, %365, %cst_100 [2] : vector<2x8x32xf32> to vector<2x8xf32>
    %cst_101 = arith.constant 5.000000e-01 : f32
    %367 = vector.broadcast %cst_101 : f32 to vector<2x8xf32>
    %368 = arith.mulf %367, %366 : vector<2x8xf32>
    %369 = math.tanh %368 : vector<2x8xf32>
    %cst_102 = arith.constant 1.000000e+00 : f32
    %370 = vector.broadcast %cst_102 : f32 to vector<2x8xf32>
    %371 = arith.addf %369, %370 : vector<2x8xf32>
    %cst_103 = arith.constant 5.000000e-01 : f32
    %372 = vector.broadcast %cst_103 : f32 to vector<2x8xf32>
    %373 = arith.mulf %372, %371 : vector<2x8xf32>
    %c0_104 = arith.constant 0 : index
    %c0_105 = arith.constant 0 : index
    %374 = vector.load %arg5[%c0_104, %c0_105] : memref<2x8xf32, #tpu.memory_space<vmem>>, vector<2x8xf32>
    tpu.vector_store %arg5[%c0_104, %c0_105], %373 {strides = array<i32>} : memref<2x8xf32, #tpu.memory_space<vmem>>, vector<2x8xf32>,
    return
  }
}

</mosaic_0001>

<bundles_post_ra>
// kernel: rnnattn_forward.1
= control target key start
LH: loop header
LB: loop body
LE: loop exit
PB: predicated region body
PF: predicated region fallthrough
CT: control target
= control target key end

     0   :  { %vm33_vm0 = vcmask 1042432   ;;  %vm26_vm1 = vcmask 23552   ;;  %s2333_s0 = inlined_call_operand.vmem [shape: f32[16,32], index: 0, kind: input, shape index: {}]   ;;  %s2334_s1 = inlined_call_operand.vmem [shape: f32[16,3], index: 1, kind: input, shape index: {}]   ;;  %s2335_s2 = inlined_call_operand.vmem [shape: f32[2,1,8], index: 2, kind: input, shape index: {}]   ;;  %s2336_s3 = inlined_call_operand.vmem [shape: f32[105,128], index: 3, kind: input, shape index: {}]   ;;  %s2337_s4 = inlined_call_operand.vmem [shape: f32[112,32], index: 4, kind: input, shape index: {}]   ;;  %s2338_s5 = inlined_call_operand.hbm [shape: f32[2,8], index: 5, kind: output, shape index: {}]  }
   0x1   :  { %v21_v0 = vld [vmem:[%s2337_s4 + $0xa] sm:$0x7]  ;;  %v24_v1 = vld [vmem:[%s2334_s1] sm:$0xff]  ;;  %v1884_v2 = vld [vmem:[%s2336_s3 + $0x38] sm:$0xff] }
   0x2   :  { %1621 = vmatpush.msk.msra.mxu0 %vm33_vm0, %v21_v0  ;;  %121 = vmatpush.msra.mxu2 %v1884_v2  ;;  %v1891_v3 = vld [vmem:[%s2336_s3 + $0x30] sm:$0xff]  ;;  %v25_v4 = vld [vmem:[%s2334_s1 + $0x8] sm:$0xff]  ;;  %v69_v5 = vld [vmem:[%s2336_s3 + $0x18] sm:$0xff] }
   0x3   :  { %1622 = vmatmul.msk.f32.vlgmr.msra.gmra.mxu0 %vm26_vm1, %v24_v1  ;;  %1665 = vmatpush.msk.msra.mxu1 %vm33_vm0, %v21_v0  ;;  %v1903_v6 = vld [vmem:[%s2336_s3 + $0x28] sm:$0xff] }
   0x4   :  { %122 = vmatpush.msra.mxu2 %v1891_v3  ;;  %1623 = vmatmul.msk.f32.vlgmr.msra.gmra.mxu1 %vm26_vm1, %v25_v4 }
   0x5   :  { %95 = vmatpush.msrb.mxu1 %v69_v5  ;;  %169 = vmatpush.msra.mxu3 %v1884_v2 }
   0x6   :  { %123 = vmatpush.msra.mxu2 %v1903_v6  ;;  %334 = vmatpush.msrb.mxu0 %v1884_v2 }
   0x7   :  { %170 = vmatpush.msra.mxu3 %v1891_v3 }
   0x8   :  { %335 = vmatpush.msrb.mxu0 %v1891_v3 }
   0x9   :  { %10 = vsyncpa [#allocation3], 0  ;;  %171 = vmatpush.msra.mxu3 %v1903_v6  ;;  %v68_v7 = vld [vmem:[%s2336_s3 + $0x10] sm:$0xff]  ;;  %v1919_v8 = vld [vmem:[%s2336_s3 + $0x20] sm:$0xff]  ;;  %v1827_v9 = vmov 0.0   ;;  %vm76_vm2 = vcmask 261120  }
   0xa   :  { %336 = vmatpush.msrb.mxu0 %v1903_v6  ;;  %96 = vmatpush.msrb.mxu1 %v68_v7  ;;  %v67_v10 = vld [vmem:[%s2336_s3 + $0x8] sm:$0xff]  ;;  %v66_v11 = vld [vmem:[%s2336_s3] sm:$0xff]  ;;  %s1829_s22 = smov 32   ;;  %vm594_vm3 = vcmask 1040384   ;;  %vm597_vm4 = vcmask 1041408   ;;  %vm602_vm5 = vcmask 1043456  }
   0xb   :  { %124 = vmatpush.msra.mxu2 %v1919_v8  ;;  %172 = vmatpush.msra.mxu3 %v1919_v8  ;;  %v22_v12 = vld [vmem:[%s2333_s0] sm:$0xff]  ;;  %v23_v16 = vld [vmem:[%s2333_s0 + $0x8] sm:$0xff]  ;;  %s1828_s0 = smov 64   ;;  %vm605_vm6 = vcmask 1044480   ;;  %vm608_vm7 = vcmask 1045504   ;;  %vm611_vm8 = vcmask 1046528  }
   0xc   :  { %125 = vmatmul.f32.vlgmr.msra.gmra.mxu2 %v1827_v9  ;;  %97 = vmatpush.msrb.mxu1 %v67_v10  ;;  %v1689_v13 = vld [vmem:[%s2337_s4] ss:$0 sm:$0xff]  ;;  %s1830_s7 = smov 96   ;;  %s1831_s8 = smov 80   ;;  %vm658_vm9 = vcmask 64512  }
   0xd   :  { %224 = vmatpush.msrb.mxu2 %v1884_v2  ;;  %279 = vmatpush.msrb.mxu3 %v1884_v2  ;;  %v1960_v21 = vld [vmem:[%s2336_s3 + $0x40] ss:$0 sm:$0xff]  ;;  %s1832_s9 = smov 88   ;;  %s1834_s10 = smov 112  }
   0xe   :  { %337 = vmatpush.msrb.mxu0 %v1919_v8  ;;  %98 = vmatpush.msrb.mxu1 %v66_v11  ;;  %s1835_s11 = smov 72   ;;  %s1836_s14 = smov 104  }
   0xf   :  { %225 = vmatpush.msrb.mxu2 %v1891_v3  ;;  %280 = vmatpush.msrb.mxu3 %v1891_v3  ;;  %s1838_s17 = smov 48   ;;  %s1839_s18 = smov 40  }
  0x10   :  { %385 = vmatpush.msra.mxu1 %v1884_v2  ;;  %s1840_s19 = smov 8   ;;  %s1841_s20 = smov 16  }
  0x11   :  { %226 = vmatpush.msrb.mxu2 %v1903_v6  ;;  %281 = vmatpush.msrb.mxu3 %v1903_v6  ;;  %s1842_s21 = smov 24  }
  0x12   :  { %386 = vmatpush.msra.mxu1 %v1891_v3 }
  0x13   :  { %227 = vmatpush.msrb.mxu2 %v1919_v8  ;;  %282 = vmatpush.msrb.mxu3 %v1919_v8 }
  0x14   :  { %387 = vmatpush.msra.mxu1 %v1903_v6 }
  0x15   :  { %440 = vmatpush.msra.mxu2 %v1884_v2 }
  0x16   :  { %388 = vmatpush.msra.mxu1 %v1919_v8 }
  0x17   :  { %441 = vmatpush.msra.mxu2 %v1891_v3 }
  0x19   :  { %442 = vmatpush.msra.mxu2 %v1903_v6 }
  0x1b   :  { %443 = vmatpush.msra.mxu2 %v1919_v8 }
  0x80   :  { %v54_v14 = vpop.f32.mrf.mxu0 }
  0x81   :  { %v60_v15 = vadd.f32 %v54_v14, %v22_v12  ;;  %v57_v17 = vpop.f32.mrf.mxu1 }
  0x82   :  { %v61_v19 = vadd.f32 %v57_v17, %v23_v16 }
  0x83   :  { %v64_v18 = vadd.f32 %v1689_v13, %v60_v15 }
  0x84   :  { %v65_v20 = vadd.f32 %v1689_v13, %v61_v19 }
  0x85   :  { %1624 = vmatmul.msk.f32.vlgmr.msrb.gmra.mxu1 %vm76_vm2, %v64_v18 }
  0x8d   :  { %1625 = vmatmul.msk.f32.gmra.mxu1 %vm76_vm2, %v65_v20 }
  0x8f   :  { %v126_v23 = vpop.f32.mrf.mxu2 }
 0x102   :  { %v100_v22 = vpop.f32.mrf.mxu1 }
 0x103   :  { %v1963_v24 = vadd.f32 %v1960_v21, %v100_v22 }
 0x105   :  { %v129_v25 = vadd.f32 %v126_v23, %v1963_v24 }
 0x107   :  { %1703 = vtanh.f32 %v129_v25  ;;  %v130_v27 = vmul.f32 0.5, %v129_v25 }
 0x109   :  { %1705 = vtanh.f32 %v130_v27 }
 0x10d   :  { %v1704_v26 = vpop.eup %1703 }
 0x10e   :  { %137 = vrot.lane.b32.xlu0 %v1704_v26, %s1828_s0 }
 0x10f   :  { %v1706_v28 = vpop.eup %1705 }
 0x110   :  { %v132_v29 = vadd.f32 1.0, %v1706_v28 }
 0x112   :  { %v133_v30 = vmul.f32 0.5, %v132_v29 }
 0x114   :  { %v135_v33 = vmul.f32 0.0, %v133_v30 }
 0x180   :  { %v138_v31 = vpop.permute.xlu0 %137 }
 0x181   :  { %v140_v32 = vmul.f32 %v138_v31, %v133_v30 }
 0x183   :  { %142 = vrot.lane.b32.xlu0 %v140_v32, %s1829_s22 }
 0x1f5   :  { %v143_v34 = vpop.permute.xlu0 %142 }
 0x1f6   :  { %v145_v35 = vadd.f32 %v143_v34, %v135_v33 }
 0x1f8   :  { %1707 = vtanh.f32 %v145_v35  ;;  %v187_v50 = vrot.slane %v145_v35, 6 }
 0x1fe   :  { %v1708_v36 = vpop.eup %1707 }
 0x1ff   :  { %148 = vrot.lane.b32.xlu1 %v1708_v36, %s1828_s0 }
 0x271   :  { %v149_v37 = vpop.permute.xlu1 %148 }
 0x272   :  { %v1969_v38 = vmul.f32 %v149_v37, %v133_v30 }
 0x274   :  { %153 = vrot.lane.b32.xlu1 %v1969_v38, %s1829_s22 }
 0x2e6   :  { %v154_v39 = vpop.permute.xlu1 %153 }
 0x2e7   :  { %1626 = vmatmul.msk.f32.vlgmr.msra.gmra.mxu3 %vm76_vm2, %v154_v39  ;;  %v103_v39 = vpop.f32.mrf.mxu1 }
 0x2e8   :  { %495 = vmatpush.msra.mxu3 %v1884_v2 }
 0x2ea   :  { %496 = vmatpush.msra.mxu3 %v1891_v3 }
 0x2ec   :  { %497 = vmatpush.msra.mxu3 %v1903_v6 }
 0x2ee   :  { %498 = vmatpush.msra.mxu3 %v1919_v8 }
 0x36a   :  { %v174_v40 = vpop.f32.mrf.mxu3 }
 0x36b   :  { %v178_v41 = vrot.slane %v174_v40, 6  ;;  %v2005_v40 = vadd.f32 %v1960_v21, %v103_v39 }
 0x36d   :  { %v180_v42 = vadd.f32 %v178_v41, %v1963_v24 }
 0x36f   :  { %1709 = vtanh.f32 %v180_v42  ;;  %v181_v44 = vmul.f32 0.5, %v180_v42 }
 0x371   :  { %1711 = vtanh.f32 %v181_v44 }
 0x375   :  { %v1710_v43 = vpop.eup %1709 }
 0x376   :  { %191 = vrot.lane.b32.xlu2 %v1710_v43, %s1828_s0 }
 0x377   :  { %v1712_v45 = vpop.eup %1711 }
 0x378   :  { %v183_v46 = vadd.f32 1.0, %v1712_v45 }
 0x37a   :  { %v184_v47 = vmul.f32 0.5, %v183_v46 }
 0x37c   :  { %v189_v51 = vmul.f32 %v187_v50, %v184_v47 }
 0x3d0   :  { %v192_v48 = vpop.permute.xlu2 %191 }
 0x3d1   :  { %v194_v49 = vmul.f32 %v192_v48, %v184_v47 }
 0x3d3   :  { %196 = vrot.lane.b32.xlu2 %v194_v49, %s1829_s22 }
 0x42d   :  { %v197_v52 = vpop.permute.xlu2 %196 }
 0x42e   :  { %v199_v53 = vadd.f32 %v197_v52, %v189_v51 }
 0x430   :  { %1713 = vtanh.f32 %v199_v53  ;;  %v242_v5 = vrot.slane %v199_v53, 6 }
 0x436   :  { %v1714_v54 = vpop.eup %1713 }
 0x437   :  { %202 = vrot.lane.b32.xlu0 %v1714_v54, %s1828_s0 }
 0x4a9   :  { %v203_v55 = vpop.permute.xlu0 %202 }
 0x4aa   :  { %v205_v56 = vmul.f32 %v203_v55, %v184_v47 }
 0x4ac   :  { %v207_v57 = vrot.slane %v205_v56, 2  ;;  %534 = vst [vmem:[#allocation1] sm:$0xff] %v205_v56 }
 0x4ae   :  { %208 = vrot.lane.b32.xlu1 %v207_v57, %s1829_s22 }
 0x4b3   :  { %v1988_v12 = vld [vmem:[#allocation1 + $0x2] ss:$9 sm:$0xff] }
 0x4b4   :  { %v1990_v13 = vld [vmem:[#allocation1 + $0x3] ss:$9 sm:$0xff] }
 0x520   :  { %v209_v58 = vpop.permute.xlu1 %208 }
 0x521   :  { %1627 = vmatmul.msk.f32.vlgmr.msrb.gmra.mxu2 %vm76_vm2, %v209_v58 }
 0x5a4   :  { %v229_v59 = vpop.f32.mrf.mxu2 }
 0x5a5   :  { %v233_v60 = vrot.slane %v229_v59, 4 }
 0x5a7   :  { %v235_v61 = vadd.f32 %v233_v60, %v1963_v24 }
 0x5a9   :  { %1715 = vtanh.f32 %v235_v61  ;;  %v236_v63 = vmul.f32 0.5, %v235_v61 }
 0x5ab   :  { %1717 = vtanh.f32 %v236_v63 }
 0x5af   :  { %v1716_v62 = vpop.eup %1715 }
 0x5b0   :  { %246 = vrot.lane.b32.xlu2 %v1716_v62, %s1828_s0 }
 0x5b1   :  { %v1718_v0 = vpop.eup %1717 }
 0x5b2   :  { %v238_v1 = vadd.f32 1.0, %v1718_v0 }
 0x5b4   :  { %v239_v2 = vmul.f32 0.5, %v238_v1 }
 0x5b6   :  { %v244_v6 = vmul.f32 %v242_v5, %v239_v2 }
 0x60a   :  { %v247_v3 = vpop.permute.xlu2 %246 }
 0x60b   :  { %v249_v4 = vmul.f32 %v247_v3, %v239_v2 }
 0x60d   :  { %251 = vrot.lane.b32.xlu0 %v249_v4, %s1829_s22 }
 0x67f   :  { %v252_v7 = vpop.permute.xlu0 %251 }
 0x680   :  { %v254_v8 = vadd.f32 %v252_v7, %v244_v6 }
 0x682   :  { %1719 = vtanh.f32 %v254_v8  ;;  %v297_v28 = vrot.slane %v254_v8, 6 }
 0x688   :  { %v1720_v9 = vpop.eup %1719 }
 0x689   :  { %257 = vrot.lane.b32.xlu1 %v1720_v9, %s1828_s0 }
 0x6fb   :  { %v258_v10 = vpop.permute.xlu1 %257 }
 0x6fc   :  { %v260_v11 = vmul.f32 %v258_v10, %v239_v2 }
 0x6fe   :  { %v262_v14 = vrot.slane %v260_v11, 4  ;;  %539 = vst [vmem:[#allocation1] sm:$0xff] %v260_v11 }
 0x700   :  { %263 = vrot.lane.b32.xlu2 %v262_v14, %s1829_s22 }
 0x705   :  { %v1998_v34 = vld [vmem:[#allocation1 + $0x4] ss:$9 sm:$0xff] }
 0x706   :  { %v2000_v35 = vld [vmem:[#allocation1 + $0x5] ss:$9 sm:$0xff] }
 0x75a   :  { %v264_v15 = vpop.permute.xlu2 %263 }
 0x75b   :  { %1628 = vmatmul.msk.f32.vlgmr.msrb.gmra.mxu3 %vm76_vm2, %v264_v15 }
 0x7de   :  { %v284_v16 = vpop.f32.mrf.mxu3 }
 0x7df   :  { %v288_v17 = vrot.slane %v284_v16, 2 }
 0x7e1   :  { %v290_v18 = vadd.f32 %v288_v17, %v1963_v24 }
 0x7e3   :  { %1721 = vtanh.f32 %v290_v18  ;;  %v291_v20 = vmul.f32 0.5, %v290_v18 }
 0x7e5   :  { %1723 = vtanh.f32 %v291_v20 }
 0x7e9   :  { %v1722_v19 = vpop.eup %1721 }
 0x7ea   :  { %301 = vrot.lane.b32.xlu0 %v1722_v19, %s1828_s0 }
 0x7eb   :  { %v1724_v22 = vpop.eup %1723 }
 0x7ec   :  { %v293_v23 = vadd.f32 1.0, %v1724_v22 }
 0x7ee   :  { %v294_v25 = vmul.f32 0.5, %v293_v23 }
 0x7f0   :  { %v299_v29 = vmul.f32 %v297_v28, %v294_v25 }
 0x85c   :  { %v302_v26 = vpop.permute.xlu0 %301 }
 0x85d   :  { %v304_v27 = vmul.f32 %v302_v26, %v294_v25 }
 0x85f   :  { %306 = vrot.lane.b32.xlu1 %v304_v27, %s1829_s22 }
 0x8d1   :  { %v307_v30 = vpop.permute.xlu1 %306 }
 0x8d2   :  { %v309_v31 = vadd.f32 %v307_v30, %v299_v29 }
 0x8d4   :  { %1725 = vtanh.f32 %v309_v31  ;;  %v349_v50 = vrot.slane %v309_v31, 6 }
 0x8da   :  { %v1726_v32 = vpop.eup %1725 }
 0x8db   :  { %312 = vrot.lane.b32.xlu2 %v1726_v32, %s1828_s0 }
 0x935   :  { %v313_v24 = vpop.permute.xlu2 %312 }
 0x936   :  { %v315_v33 = vmul.f32 %v313_v24, %v294_v25 }
 0x938   :  { %v317_v36 = vrot.slane %v315_v33, 6  ;;  %544 = vst [vmem:[#allocation1] sm:$0xff] %v315_v33 }
 0x93a   :  { %318 = vrot.lane.b32.xlu0 %v317_v36, %s1829_s22 }
 0x93f   :  { %v2020_v10 = vld [vmem:[#allocation1 + $0x7] ss:$9 sm:$0xff] }
 0x940   :  { %v2022_v11 = vld [vmem:[#allocation1 + $0x6] ss:$9 sm:$0xff] }
 0x9ac   :  { %v319_v37 = vpop.permute.xlu0 %318 }
 0x9ad   :  { %1629 = vmatmul.msk.f32.vlgmr.msrb.gmra.mxu0 %vm76_vm2, %v319_v37 }
 0xa2a   :  { %v339_v41 = vpop.f32.mrf.mxu0 }
 0xa2b   :  { %v342_v42 = vadd.f32 %v339_v41, %v2005_v40 }
 0xa2d   :  { %1727 = vtanh.f32 %v342_v42  ;;  %v343_v44 = vmul.f32 0.5, %v342_v42 }
 0xa2f   :  { %1729 = vtanh.f32 %v343_v44 }
 0xa33   :  { %v1728_v43 = vpop.eup %1727 }
 0xa34   :  { %353 = vrot.lane.b32.xlu1 %v1728_v43, %s1828_s0 }
 0xa35   :  { %v1730_v45 = vpop.eup %1729 }
 0xa36   :  { %v345_v46 = vadd.f32 1.0, %v1730_v45 }
 0xa38   :  { %v346_v47 = vmul.f32 0.5, %v345_v46 }
 0xa3a   :  { %v351_v51 = vmul.f32 %v349_v50, %v346_v47 }
 0xaa6   :  { %v354_v48 = vpop.permute.xlu1 %353 }
 0xaa7   :  { %v356_v49 = vmul.f32 %v354_v48, %v346_v47 }
 0xaa9   :  { %358 = vrot.lane.b32.xlu2 %v356_v49, %s1829_s22 }
 0xb03   :  { %v359_v21 = vpop.permute.xlu2 %358 }
 0xb04   :  { %v361_v52 = vadd.f32 %v359_v21, %v351_v51 }
 0xb06   :  { %1731 = vtanh.f32 %v361_v52  ;;  %v403_v3 = vrot.slane %v361_v52, 6 }
 0xb0c   :  { %v1732_v53 = vpop.eup %1731 }
 0xb0d   :  { %364 = vrot.lane.b32.xlu0 %v1732_v53, %s1828_s0 }
 0xb7f   :  { %v365_v54 = vpop.permute.xlu0 %364 }
 0xb80   :  { %v2011_v55 = vmul.f32 %v365_v54, %v346_v47 }
 0xb82   :  { %369 = vrot.lane.b32.xlu1 %v2011_v55, %s1829_s22 }
 0xbf4   :  { %v370_v56 = vpop.permute.xlu1 %369 }
 0xbf5   :  { %1630 = vmatmul.msk.f32.vlgmr.msra.gmra.mxu1 %vm76_vm2, %v370_v56 }
 0xc72   :  { %v390_v57 = vpop.f32.mrf.mxu1 }
 0xc73   :  { %v394_v58 = vrot.slane %v390_v57, 6  ;;  %v616_v57 = vld [vmem:[%s2336_s3 + $0x58] sm:$0xff] }
 0xc75   :  { %v396_v59 = vadd.f32 %v394_v58, %v2005_v40  ;;  %v615_v58 = vld [vmem:[%s2336_s3 + $0x50] sm:$0xff] }
 0xc77   :  { %1733 = vtanh.f32 %v396_v59  ;;  %v397_v61 = vmul.f32 0.5, %v396_v59  ;;  %v614_v59 = vld [vmem:[%s2336_s3 + $0x48] sm:$0xff] }
 0xc79   :  { %1735 = vtanh.f32 %v397_v61 }
 0xc7d   :  { %v1734_v60 = vpop.eup %1733 }
 0xc7e   :  { %407 = vrot.lane.b32.xlu2 %v1734_v60, %s1828_s0 }
 0xc7f   :  { %v1736_v62 = vpop.eup %1735 }
 0xc80   :  { %v399_v63 = vadd.f32 1.0, %v1736_v62  ;;  %v566_v62 = vperm.slane %v1988_v12, 0  ;;  %v578_v12 = vperm.slane %v2011_v55, 0 }
 0xc82   :  { %v400_v0 = vmul.f32 0.5, %v399_v63  ;;  %v549_v63 = vrot.slane %v2011_v55, 1 }
 0xc84   :  { %v405_v4 = vmul.f32 %v403_v3, %v400_v0  ;;  %v570_v3 = vperm.slane %v1998_v34, 0 }
 0xcd8   :  { %v408_v1 = vpop.permute.xlu2 %407 }
 0xcd9   :  { %v410_v2 = vmul.f32 %v408_v1, %v400_v0 }
 0xcdb   :  { %412 = vrot.lane.b32.xlu0 %v410_v2, %s1829_s22  ;;  %v567_v2 = vperm.slane %v1990_v13, 0 }
 0xd4d   :  { %v413_v5 = vpop.permute.xlu0 %412 }
 0xd4e   :  { %v415_v6 = vadd.f32 %v413_v5, %v405_v4  ;;  %v532_v4 = vrot.slane %v1969_v38, 1  ;;  %v571_v5 = vperm.slane %v2000_v35, 0 }
 0xd50   :  { %1737 = vtanh.f32 %v415_v6  ;;  %v458_v28 = vrot.slane %v415_v6, 6  ;;  %v574_v6 = vperm.slane %v2022_v11, 0 }
 0xd56   :  { %v1738_v7 = vpop.eup %1737 }
 0xd57   :  { %418 = vrot.lane.b32.xlu1 %v1738_v7, %s1828_s0  ;;  %v575_v7 = vperm.slane %v2020_v10, 0 }
 0xdc9   :  { %v419_v8 = vpop.permute.xlu1 %418 }
 0xdca   :  { %v421_v9 = vmul.f32 %v419_v8, %v400_v0  ;;  %v579_v8 = vperm.slane %v549_v63, 0 }
 0xdcc   :  { %v423_v14 = vrot.slane %v421_v9, 2  ;;  %550 = vst [vmem:[#allocation1] sm:$0xff] %v421_v9  ;;  %v595_v9 = vsel %vm594_vm3, %v1969_v38, %v566_v62 }
 0xdce   :  { %424 = vrot.lane.b32.xlu2 %v423_v14, %s1829_s22  ;;  %v596_v14 = vsel %vm594_vm3, %v532_v4, %v567_v2 }
 0xdcf   :  { %v599_v35 = vsel %vm597_vm4, %v596_v14, %v571_v5 }
 0xdd0   :  { %v601_v10 = vsel %vm33_vm0, %v599_v35, %v575_v7 }
 0xdd3   :  { %v2030_v36 = vld [vmem:[#allocation1 + $0x2] ss:$9 sm:$0xff] }
 0xdd4   :  { %v2032_v37 = vld [vmem:[#allocation1 + $0x3] ss:$9 sm:$0xff]  ;;  %v582_v13 = vperm.slane %v2030_v36, 0 }
 0xdd5   :  { %v583_v34 = vperm.slane %v2032_v37, 0 }
 0xe28   :  { %v425_v15 = vpop.permute.xlu2 %424 }
 0xe29   :  { %1631 = vmatmul.msk.f32.vlgmr.msra.gmra.mxu2 %vm76_vm2, %v425_v15  ;;  %v598_v15 = vsel %vm597_vm4, %v595_v9, %v570_v3 }
 0xe2a   :  { %v600_v11 = vsel %vm33_vm0, %v598_v15, %v574_v6 }
 0xeac   :  { %v445_v16 = vpop.f32.mrf.mxu2 }
 0xead   :  { %v449_v17 = vrot.slane %v445_v16, 4 }
 0xeaf   :  { %v451_v18 = vadd.f32 %v449_v17, %v2005_v40 }
 0xeb1   :  { %1739 = vtanh.f32 %v451_v18  ;;  %v452_v20 = vmul.f32 0.5, %v451_v18  ;;  %v603_v18 = vsel %vm602_vm5, %v600_v11, %v578_v12 }
 0xeb3   :  { %1741 = vtanh.f32 %v452_v20 }
 0xeb7   :  { %v1740_v19 = vpop.eup %1739 }
 0xeb8   :  { %462 = vrot.lane.b32.xlu0 %v1740_v19, %s1828_s0  ;;  %v604_v19 = vsel %vm602_vm5, %v601_v10, %v579_v8 }
 0xeb9   :  { %v1742_v22 = vpop.eup %1741 }
 0xeba   :  { %v454_v23 = vadd.f32 1.0, %v1742_v22  ;;  %v606_v22 = vsel %vm605_vm6, %v603_v18, %v582_v13 }
 0xebc   :  { %v455_v25 = vmul.f32 0.5, %v454_v23 }
 0xebe   :  { %v460_v29 = vmul.f32 %v458_v28, %v455_v25 }
 0xf2a   :  { %v463_v26 = vpop.permute.xlu0 %462 }
 0xf2b   :  { %v465_v27 = vmul.f32 %v463_v26, %v455_v25 }
 0xf2d   :  { %467 = vrot.lane.b32.xlu1 %v465_v27, %s1829_s22 }
 0xf9f   :  { %v468_v30 = vpop.permute.xlu1 %467 }
 0xfa0   :  { %v470_v31 = vadd.f32 %v468_v30, %v460_v29 }
 0xfa2   :  { %1743 = vtanh.f32 %v470_v31  ;;  %v513_v21 = vrot.slane %v470_v31, 6 }
 0xfa8   :  { %v1744_v32 = vpop.eup %1743 }
 0xfa9   :  { %473 = vrot.lane.b32.xlu2 %v1744_v32, %s1828_s0  ;;  %v1691_v32 = vld [vmem:[%s2336_s3 + $0x68] ss:$0 sm:$0xff] }
0x1003   :  { %v474_v24 = vpop.permute.xlu2 %473 }
0x1004   :  { %v476_v33 = vmul.f32 %v474_v24, %v455_v25  ;;  %v607_v25 = vsel %vm605_vm6, %v604_v19, %v583_v34 }
0x1006   :  { %v478_v39 = vrot.slane %v476_v33, 4  ;;  %555 = vst [vmem:[#allocation1] sm:$0xff] %v476_v33 }
0x1008   :  { %479 = vrot.lane.b32.xlu0 %v478_v39, %s1829_s22 }
0x100d   :  { %v557_v0 = vld [vmem:[#allocation1 + $0x4] ss:$9 sm:$0xff] }
0x100e   :  { %v559_v1 = vld [vmem:[#allocation1 + $0x5] ss:$9 sm:$0xff]  ;;  %v586_v16 = vperm.slane %v557_v0, 0 }
0x100f   :  { %v587_v17 = vperm.slane %v559_v1, 0 }
0x1010   :  { %v609_v26 = vsel %vm608_vm7, %v606_v22, %v586_v16 }
0x1011   :  { %v610_v27 = vsel %vm608_vm7, %v607_v25, %v587_v17 }
0x107a   :  { %v480_v41 = vpop.permute.xlu0 %479 }
0x107b   :  { %1632 = vmatmul.msk.f32.vlgmr.msra.gmra.mxu3 %vm76_vm2, %v480_v41 }
0x10fe   :  { %v500_v42 = vpop.f32.mrf.mxu3 }
0x10ff   :  { %v504_v43 = vrot.slane %v500_v42, 2 }
0x1101   :  { %v506_v44 = vadd.f32 %v504_v43, %v2005_v40  ;;  %v617_v40 = vld [vmem:[%s2336_s3 + $0x60] sm:$0xff]  ;;  %s1833_s3 = smov 120  }
0x1102   :  { %642 = vmatpush.msra.mxu0 %v617_v40 }
0x1103   :  { %1745 = vtanh.f32 %v506_v44  ;;  %v507_v46 = vmul.f32 0.5, %v506_v44 }
0x1104   :  { %643 = vmatpush.msra.mxu0 %v616_v57 }
0x1105   :  { %1747 = vtanh.f32 %v507_v46 }
0x1106   :  { %644 = vmatpush.msra.mxu0 %v615_v58 }
0x1108   :  { %645 = vmatpush.msra.mxu0 %v614_v59 }
0x1109   :  { %v1746_v45 = vpop.eup %1745 }
0x110a   :  { %517 = vrot.lane.b32.xlu1 %v1746_v45, %s1828_s0 }
0x110b   :  { %v1748_v47 = vpop.eup %1747 }
0x110c   :  { %v509_v48 = vadd.f32 1.0, %v1748_v47 }
0x110e   :  { %v510_v49 = vmul.f32 0.5, %v509_v48 }
0x1110   :  { %v515_v52 = vmul.f32 %v513_v21, %v510_v49 }
0x117c   :  { %v518_v50 = vpop.permute.xlu1 %517 }
0x117d   :  { %v520_v51 = vmul.f32 %v518_v50, %v510_v49  ;;  %v2112_v50 = vld [vmem:[%s2335_s2] ss:$0 sm:$0xff] }
0x117f   :  { %522 = vrot.lane.b32.xlu2 %v520_v51, %s1829_s22 }
0x11d9   :  { %v523_v53 = vpop.permute.xlu2 %522 }
0x11da   :  { %v525_v54 = vadd.f32 %v523_v53, %v515_v52 }
0x11dc   :  { %1749 = vtanh.f32 %v525_v54 }
0x11e2   :  { %v1750_v56 = vpop.eup %1749 }
0x11e3   :  { %528 = vrot.lane.b32.xlu0 %v1750_v56, %s1828_s0 }
0x1255   :  { %v529_v60 = vpop.permute.xlu0 %528 }
0x1256   :  { %v531_v61 = vmul.f32 %v529_v60, %v510_v49  ;;  %v2124_v60 = vld [vmem:[%s2335_s2 + $0x1] ss:$0 sm:$0xff]  ;;  %s1837_s2 = smov 56  }
0x1258   :  { %561 = vst [vmem:[#allocation1] sm:$0xff] %v531_v61 }
0x125f   :  { %v563_v55 = vld [vmem:[#allocation1 + $0x6] ss:$9 sm:$0xff] }
0x1260   :  { %v565_v38 = vld [vmem:[#allocation1 + $0x7] ss:$9 sm:$0xff]  ;;  %v590_v20 = vperm.slane %v563_v55, 0 }
0x1261   :  { %v591_v23 = vperm.slane %v565_v38, 0 }
0x1262   :  { %v612_v28 = vsel %vm611_vm8, %v609_v26, %v590_v20 }
0x1263   :  { %v613_v29 = vsel %vm611_vm8, %v610_v27, %v591_v23  ;;  %622 = vrot.lane.b32.xlu1 %v612_v28, %s1829_s22 }
0x1264   :  { %624 = vrot.lane.b32.xlu0 %v613_v29, %s1829_s22 }
0x12d5   :  { %v2068_v30 = vpop.permute.xlu1 %622 }
0x12d6   :  { %1633 = vmatmul.msk.f32.vlgmr.msra.gmra.mxu0 %vm76_vm2, %v2068_v30  ;;  %v2072_v31 = vpop.permute.xlu0 %624 }
0x12de   :  { %1634 = vmatmul.msk.f32.gmra.mxu0 %vm76_vm2, %v2072_v31 }
0x1353   :  { %v647_v24 = vpop.f32.mrf.mxu0 }
0x1354   :  { %v2079_v33 = vadd.f32 %v1691_v32, %v647_v24 }
0x1356   :  { %656 = vrot.lane.b32.xlu2 %v2079_v33, %s1830_s7 }
0x135b   :  { %v650_v36 = vpop.f32.mrf.mxu0 }
0x135c   :  { %v2082_v37 = vadd.f32 %v1691_v32, %v650_v36 }
0x135e   :  { %982 = vrot.lane.b32.xlu2 %v2079_v33, %s1831_s8  ;;  %684 = vrot.lane.b32.xlu0 %v2082_v37, %s1830_s7 }
0x1366   :  { %822 = vrot.lane.b32.xlu0 %v2079_v33, %s1832_s9 }
0x136e   :  { %768 = vrot.lane.b32.xlu0 %v2079_v33, %s1828_s0 }
0x1376   :  { %820 = vrot.lane.b32.xlu0 %v2079_v33, %s1833_s3 }
0x137e   :  { %850 = vrot.lane.b32.xlu0 %v2082_v37, %s1832_s9 }
0x1386   :  { %980 = vrot.lane.b32.xlu0 %v2079_v33, %s1834_s10 }
0x138e   :  { %1010 = vrot.lane.b32.xlu0 %v2082_v37, %s1831_s8 }
0x1396   :  { %1142 = vrot.lane.b32.xlu0 %v2079_v33, %s1835_s11 }
0x139e   :  { %1170 = vrot.lane.b32.xlu0 %v2082_v37, %s1835_s11 }
0x13b0   :  { %v657_v39 = vpop.permute.xlu2 %656 }
0x13b1   :  { %1635 = vmatpush.xpose.msk.msrb.mxu1 %vm658_vm9, %v657_v39 }
0x13b4   :  { %1636 = vmatmul.msk.f32.vlgmr.msrb.gmra.mxu1 %vm658_vm9, %v2079_v33 }
0x13b8   :  { %v983_v43 = vpop.permute.xlu2 %982 }
0x13d0   :  { %v685_v41 = vpop.permute.xlu0 %684 }
0x13d1   :  { %1637 = vmatpush.xpose.msk.msrb.mxu2 %vm658_vm9, %v685_v41 }
0x13d4   :  { %1638 = vmatmul.msk.f32.vlgmr.msrb.gmra.mxu2 %vm658_vm9, %v2082_v37 }
0x13d8   :  { %v823_v42 = vpop.permute.xlu0 %822 }
0x13d9   :  { %1641 = vmatpush.xpose.msk.msra.mxu2 %vm658_vm9, %v823_v42 }
0x13dd   :  { %1647 = vmatpush.xpose.msk.msrb.mxu2 %vm658_vm9, %v983_v43 }
0x13e0   :  { %v769_v44 = vpop.permute.xlu0 %768 }
0x13e1   :  { %789 = vmatpush.msrb.mxu3 %v769_v44 }
0x13e8   :  { %v821_v45 = vpop.permute.xlu0 %820 }
0x13e9   :  { %1642 = vmatmul.msk.f32.vlgmr.msra.gmra.mxu2 %vm658_vm9, %v821_v45 }
0x13f0   :  { %v851_v46 = vpop.permute.xlu0 %850 }
0x13f1   :  { %1643 = vmatpush.xpose.msk.msra.mxu3 %vm658_vm9, %v851_v46 }
0x13f8   :  { %v981_v47 = vpop.permute.xlu0 %980 }
0x13f9   :  { %1648 = vmatmul.msk.f32.vlgmr.msrb.gmra.mxu2 %vm658_vm9, %v981_v47 }
0x1400   :  { %v1011_v48 = vpop.permute.xlu0 %1010 }
0x1408   :  { %v1143_v49 = vpop.permute.xlu0 %1142 }
0x1409   :  { %1653 = vmatpush.xpose.msk.msra.mxu2 %vm658_vm9, %v1143_v49 }
0x1410   :  { %v1171_v38 = vpop.permute.xlu0 %1170 }
0x1431   :  { %v680_v51 = vpop.f32.mrf.mxu1 }
0x1432   :  { %v710_v21 = vmul.f32 0.35355338, %v680_v51 }
0x1434   :  { %v718_v52 = vadd.f32 %v2112_v50, %v710_v21 }
0x1436   :  { %v720_v53 = vsel %vm658_vm9, %v718_v52, -inf }
0x1437   :  { %721 = vmax.xlane.f32.xlu1 %v720_v53 }
0x1450   :  { %848 = vrot.lane.b32.xlu1 %v2082_v37, %s1833_s3 }
0x1457   :  { %v707_v54 = vpop.f32.mrf.mxu2 }
0x1458   :  { %1140 = vrot.lane.b32.xlu1 %v2079_v33, %s1836_s14  ;;  %v711_v59 = vmul.f32 0.35355338, %v707_v54 }
0x145a   :  { %v2127_v61 = vadd.f32 %v2124_v60, %v711_v59 }
0x145c   :  { %v723_v0 = vsel %vm658_vm9, %v2127_v61, -inf }
0x146c   :  { %v845_v56 = vpop.f32.mrf.mxu2 }
0x146d   :  { %v876_v40 = vmul.f32 0.35355338, %v845_v56 }
0x146f   :  { %v878_v57 = vadd.f32 %v2112_v50, %v876_v40 }
0x1471   :  { %v880_v58 = vsel %vm658_vm9, %v878_v57, -inf }
0x1472   :  { %881 = vmax.xlane.f32.xlu0 %v880_v58 }
0x147c   :  { %v1005_v62 = vpop.f32.mrf.mxu2 }
0x147d   :  { %v1036_v63 = vmul.f32 0.35355338, %v1005_v62 }
0x147f   :  { %v2132_v1 = vadd.f32 %v2112_v50, %v1036_v63 }
0x1481   :  { %v1040_v2 = vsel %vm658_vm9, %v2132_v1, -inf }
0x1482   :  { %724 = vmax.xlane.f32.xlu1 %v723_v0 }
0x148a   :  { %1041 = vmax.xlane.f32.xlu1 %v1040_v2 }
0x14aa   :  { %v722_v3 = vpop.xlane.xlu1 %721 }
0x14ab   :  { %v726_v4 = vsub.f32 %v718_v52, %v722_v3  ;;  %v1684_v3 = vpack.i.bf16 %v2082_v37, %v2079_v33 }
0x14ad   :  { %v728_v5 = vmul.f32 1.442695, %v726_v4 }
0x14af   :  { %1751 = vpow2.f32 %v728_v5 }
0x14b5   :  { %v1752_v6 = vpop.eup %1751 }
0x14b6   :  { %v732_v7 = vsel %vm658_vm9, %v1752_v6, 0.0 }
0x14b7   :  { %733 = vadd.xlane.f32.xlu2 %v732_v7 }
0x14c2   :  { %v849_v12 = vpop.permute.xlu1 %848 }
0x14ca   :  { %v1141_v8 = vpop.permute.xlu1 %1140 }
0x14cb   :  { %1654 = vmatmul.msk.f32.vlgmr.msra.gmra.mxu2 %vm658_vm9, %v1141_v8 }
0x14cf   :  { %1008 = vrot.lane.b32.xlu2 %v2082_v37, %s1834_s10  ;;  %s1612_s10 = sshll.u32 %s2338_s5, 4  ;;  %s1613_s10 = int_to_ptr.hbm [resolvable:$true] %s1612_s10 }
0x14d7   :  { %1168 = vrot.lane.b32.xlu2 %v2082_v37, %s1836_s14 }
0x14e5   :  { %v882_v28 = vpop.xlane.xlu0 %881 }
0x14e6   :  { %v886_v29 = vsub.f32 %v878_v57, %v882_v28 }
0x14e8   :  { %v888_v39 = vmul.f32 1.442695, %v886_v29 }
0x14f5   :  { %v725_v24 = vpop.xlane.xlu1 %724 }
0x14f6   :  { %v727_v45 = vsub.f32 %v2127_v61, %v725_v24 }
0x14f8   :  { %v730_v47 = vmul.f32 1.442695, %v727_v45 }
0x152a   :  { %v734_v9 = vpop.xlane.xlu2 %733 }
0x152b   :  { %1753 = vrcp.f32 %v734_v9  ;;  %v749_v34 = vand.u32 2147483648, %v734_v9  ;;  %v747_v17 = vand.u32 2147483647, %v734_v9  ;;  %vm743_vm11 = vweird.f32 %v734_v9 }
0x152d   :  { %v750_v11 = vor.u32 1.1754944e-38, %v749_v34  ;;  %vm748_vm13 = vcmp.eq.f32.partialorder %v747_v17, 8.507059e+37 }
0x1531   :  { %v1754_v14 = vpop.eup %1753 }
0x1532   :  { %v739_v13 = vmul.f32 %v1754_v14, %v734_v9  ;;  %vm744_vm10 = vweird.f32 %v1754_v14  ;;  %v1009_v19 = vpop.permute.xlu2 %1008 }
0x1533   :  { %vm745_vm12 = vmor %vm743_vm11, %vm744_vm10 }
0x1534   :  { %v740_v15 = vsub.f32 1.0, %v739_v13 }
0x1536   :  { %v741_v16 = vmul.f32 %v1754_v14, %v740_v15 }
0x1538   :  { %v742_v35 = vadd.f32 %v1754_v14, %v741_v16 }
0x153a   :  { %v746_v10 = vsel %vm745_vm12, %v1754_v14, %v742_v35  ;;  %v1169_v26 = vpop.permute.xlu2 %1168 }
0x153b   :  { %v751_v55 = vsel %vm748_vm13, %v750_v11, %v746_v10 }
0x153c   :  { %v752_v18 = vmul.f32 %v1752_v6, %v751_v55 }
0x153e   :  { %1639 = vmatmul.msk.f32.vlgmr.msrb.gmra.mxu3 %vm658_vm9, %v752_v18 }
0x153f   :  { %1649 = vmatpush.xpose.msk.msrb.mxu3 %vm658_vm9, %v1011_v48 }
0x1546   :  { %1644 = vmatmul.msk.f32.vlgmr.msra.gmra.mxu3 %vm658_vm9, %v849_v12 }
0x1547   :  { %1655 = vmatpush.xpose.msk.msra.mxu3 %vm658_vm9, %v1171_v38 }
0x154e   :  { %1650 = vmatmul.msk.f32.vlgmr.msrb.gmra.mxu3 %vm658_vm9, %v1009_v19  ;;  %v1165_v20 = vpop.f32.mrf.mxu2 }
0x154f   :  { %v1196_v22 = vmul.f32 0.35355338, %v1165_v20 }
0x1551   :  { %v1198_v23 = vadd.f32 %v2112_v50, %v1196_v22  ;;  %v1042_v50 = vpop.xlane.xlu1 %1041 }
0x1552   :  { %v1046_v54 = vsub.f32 %v2132_v1, %v1042_v50 }
0x1553   :  { %v1200_v25 = vsel %vm658_vm9, %v1198_v23, -inf }
0x1554   :  { %1201 = vmax.xlane.f32.xlu2 %v1200_v25  ;;  %v1048_v57 = vmul.f32 1.442695, %v1046_v54 }
0x1556   :  { %1656 = vmatmul.msk.f32.vlgmr.msra.gmra.mxu3 %vm658_vm9, %v1169_v26 }
0x15c1   :  { %v2149_v27 = vpop.f32.mrf.mxu3 }
0x15c7   :  { %v1202_v32 = vpop.xlane.xlu2 %1201 }
0x15c8   :  { %v1206_v36 = vsub.f32 %v1198_v23, %v1202_v32 }
0x15c9   :  { %v873_v41 = vpop.f32.mrf.mxu3 }
0x15ca   :  { %v1208_v42 = vmul.f32 1.442695, %v1206_v36  ;;  %v877_v43 = vmul.f32 0.35355338, %v873_v41 }
0x15cc   :  { %1755 = vpow2.f32 %v1208_v42  ;;  %v879_v44 = vadd.f32 %v2124_v60, %v877_v43 }
0x15cd   :  { %1757 = vpow2.f32 %v888_v39 }
0x15ce   :  { %v883_v46 = vsel %vm658_vm9, %v879_v44, -inf  ;;  %1759 = vpow2.f32 %v730_v47 }
0x15cf   :  { %884 = vmax.xlane.f32.xlu2 %v883_v46  ;;  %1761 = vpow2.f32 %v1048_v57 }
0x15d1   :  { %v1033_v48 = vpop.f32.mrf.mxu3 }
0x15d2   :  { %v2154_v49 = vpop.eup %1755  ;;  %v1037_v51 = vmul.f32 0.35355338, %v1033_v48 }
0x15d3   :  { %v2156_v21 = vpop.eup %1757  ;;  %v1212_v52 = vsel %vm658_vm9, %v2154_v49, 0.0 }
0x15d4   :  { %1213 = vadd.xlane.f32.xlu1 %v1212_v52  ;;  %v1039_v53 = vadd.f32 %v2124_v60, %v1037_v51  ;;  %v892_v40 = vsel %vm658_vm9, %v2156_v21, 0.0  ;;  %v2165_v61 = vpop.eup %1759 }
0x15d5   :  { %v735_v63 = vsel %vm658_vm9, %v2165_v61, 0.0  ;;  %v2171_v1 = vpop.eup %1761 }
0x15d6   :  { %v1043_v56 = vsel %vm658_vm9, %v1039_v53, -inf  ;;  %v1052_v2 = vsel %vm658_vm9, %v2171_v1, 0.0 }
0x15d7   :  { %1044 = vmax.xlane.f32.xlu0 %v1043_v56  ;;  %893 = vadd.xlane.f32.xlu2 %v892_v40 }
0x15d9   :  { %v1193_v58 = vpop.f32.mrf.mxu3 }
0x15da   :  { %v1197_v59 = vmul.f32 0.35355338, %v1193_v58 }
0x15dc   :  { %v1199_v62 = vadd.f32 %v2124_v60, %v1197_v59 }
0x15de   :  { %v1203_v0 = vsel %vm658_vm9, %v1199_v62, -inf }
0x15df   :  { %736 = vadd.xlane.f32.xlu0 %v735_v63  ;;  %1204 = vmax.xlane.f32.xlu1 %v1203_v0 }
0x15e7   :  { %1053 = vadd.xlane.f32.xlu0 %v1052_v2 }
0x15ef   :  { %1685 = vrot.lane.b32.xlu2 %v1684_v3, %s1837_s2 }
0x15fb   :  { %794 = vrot.lane.b32.xlu0 %v2082_v37, %s1828_s0 }
0x1603   :  { %1114 = vrot.lane.b32.xlu0 %v2082_v37, %s1838_s17 }
0x160b   :  { %1274 = vrot.lane.b32.xlu0 %v2082_v37, %s1839_s18 }
0x1642   :  { %v885_v60 = vpop.xlane.xlu2 %884 }
0x1643   :  { %v887_v4 = vsub.f32 %v879_v44, %v885_v60 }
0x1645   :  { %v890_v5 = vmul.f32 1.442695, %v887_v4 }
0x1647   :  { %1763 = vpow2.f32 %v890_v5  ;;  %v2183_v6 = vpop.xlane.xlu1 %1213 }
0x164a   :  { %v894_v7 = vpop.xlane.xlu2 %893  ;;  %v1045_v12 = vpop.xlane.xlu0 %1044 }
0x164b   :  { %1765 = vrcp.f32 %v894_v7  ;;  %v1047_v8 = vsub.f32 %v1039_v53, %v1045_v12  ;;  %v909_v55 = vand.u32 2147483648, %v894_v7  ;;  %v907_v20 = vand.u32 2147483647, %v894_v7 }
0x164c   :  { %vm903_vm15 = vweird.f32 %v894_v7 }
0x164d   :  { %v2185_v9 = vpop.eup %1763  ;;  %v1050_v14 = vmul.f32 1.442695, %v1047_v8  ;;  %v910_v25 = vor.u32 1.1754944e-38, %v909_v55  ;;  %vm908_vm1 = vcmp.eq.f32.partialorder %v907_v20, 8.507059e+37 }
0x164e   :  { %v895_v13 = vsel %vm658_vm9, %v2185_v9, 0.0 }
0x164f   :  { %896 = vadd.xlane.f32.xlu1 %v895_v13  ;;  %1767 = vpow2.f32 %v1050_v14 }
0x1651   :  { %v1766_v15 = vpop.eup %1765 }
0x1652   :  { %v899_v37 = vmul.f32 %v1766_v15, %v894_v7  ;;  %v1205_v34 = vpop.xlane.xlu1 %1204  ;;  %v1686_v16 = vpop.permute.xlu2 %1685  ;;  %vm904_vm14 = vweird.f32 %v1766_v15 }
0x1653   :  { %v1207_v17 = vsub.f32 %v1199_v62, %v1205_v34  ;;  %v1687_v35 = vunpack.i.l.bf16 %v1686_v16  ;;  %v737_v11 = vpop.xlane.xlu0 %736  ;;  %vm905_vm0 = vmor %vm903_vm15, %vm904_vm14  ;;  %v1688_v52 = vunpack.i.h.bf16 %v1686_v16 }
0x1654   :  { %v900_v10 = vsub.f32 1.0, %v899_v37  ;;  %1769 = vrcp.f32 %v737_v11  ;;  %v764_v44 = vand.u32 2147483648, %v737_v11  ;;  %vm758_vm4 = vweird.f32 %v737_v11 }
0x1655   :  { %v1210_v18 = vmul.f32 1.442695, %v1207_v17  ;;  %949 = vmatpush.msrb.mxu0 %v1687_v35  ;;  %v2189_v38 = vpop.eup %1767  ;;  %v762_v45 = vand.u32 2147483647, %v737_v11 }
0x1656   :  { %v901_v19 = vmul.f32 %v1766_v15, %v900_v10  ;;  %v1055_v22 = vsel %vm658_vm9, %v2189_v38, 0.0  ;;  %v765_v48 = vor.u32 1.1754944e-38, %v764_v44 }
0x1657   :  { %1771 = vpow2.f32 %v1210_v18  ;;  %1056 = vadd.xlane.f32.xlu2 %v1055_v22  ;;  %vm763_vm6 = vcmp.eq.f32.partialorder %v762_v45, 8.507059e+37 }
0x1658   :  { %v902_v23 = vadd.f32 %v1766_v15, %v901_v19 }
0x165a   :  { %v1770_v26 = vpop.eup %1769  ;;  %v906_v28 = vsel %vm905_vm0, %v1766_v15, %v902_v23 }
0x165b   :  { %v911_v29 = vsel %vm908_vm1, %v910_v25, %v906_v28  ;;  %v754_v32 = vmul.f32 %v1770_v26, %v737_v11  ;;  %vm759_vm3 = vweird.f32 %v1770_v26  ;;  %v2199_v46 = vpop.xlane.xlu0 %1053 }
0x165c   :  { %v912_v39 = vmul.f32 %v2156_v21, %v911_v29  ;;  %vm760_vm5 = vmor %vm758_vm4, %vm759_vm3 }
0x165d   :  { %v2193_v24 = vpop.eup %1771  ;;  %v755_v36 = vsub.f32 1.0, %v754_v32 }
0x165e   :  { %v1215_v41 = vsel %vm658_vm9, %v2193_v24, 0.0  ;;  %1645 = vmatmul.msk.f32.vlgmr.msrb.gmra.mxu0 %vm658_vm9, %v912_v39  ;;  %v1069_v39 = vand.u32 2147483648, %v2199_v46 }
0x165f   :  { %v756_v42 = vmul.f32 %v1770_v26, %v755_v36  ;;  %1216 = vadd.xlane.f32.xlu1 %v1215_v41 }
0x1661   :  { %v757_v43 = vadd.f32 %v1770_v26, %v756_v42 }
0x1663   :  { %v761_v47 = vsel %vm760_vm5, %v1770_v26, %v757_v43  ;;  %vm1063_vm5 = vweird.f32 %v2199_v46 }
0x1664   :  { %v766_v50 = vsel %vm763_vm6, %v765_v48, %v761_v47  ;;  %v1070_v48 = vor.u32 1.1754944e-38, %v1069_v39 }
0x1665   :  { %v767_v21 = vmul.f32 %v2165_v61, %v766_v50 }
0x166d   :  { %v795_v51 = vpop.permute.xlu0 %794 }
0x166e   :  { %815 = vmatpush.msra.mxu1 %v795_v51 }
0x166f   :  { %1640 = vmatmul.msk.f32.vlgmr.msra.gmra.mxu1 %vm658_vm9, %v767_v21  ;;  %1248 = vrot.lane.b32.xlu2 %v2079_v33, %s1839_s18  ;;  %v1229_v21 = vand.u32 2147483648, %v2183_v6 }
0x1670   :  { %975 = vmatpush.msrb.mxu1 %v1688_v52 }
0x1675   :  { %v1115_v53 = vpop.permute.xlu0 %1114 }
0x1676   :  { %1135 = vmatpush.msra.mxu1 %v1115_v53 }
0x1678   :  { %1088 = vrot.lane.b32.xlu1 %v2079_v33, %s1838_s17 }
0x167d   :  { %v1275_v14 = vpop.permute.xlu0 %1274 }
0x16c2   :  { %v897_v54 = vpop.xlane.xlu1 %896 }
0x16c3   :  { %1773 = vrcp.f32 %v897_v54  ;;  %v924_v59 = vand.u32 2147483648, %v897_v54  ;;  %v922_v62 = vand.u32 2147483647, %v897_v54  ;;  %vm918_vm8 = vweird.f32 %v897_v54 }
0x16c4   :  { %1775 = vrcp.f32 %v2199_v46 }
0x16c5   :  { %v925_v2 = vor.u32 1.1754944e-38, %v924_v59  ;;  %vm923_vm11 = vcmp.eq.f32.partialorder %v922_v62, 8.507059e+37 }
0x16c9   :  { %v1774_v56 = vpop.eup %1773 }
0x16ca   :  { %v914_v40 = vmul.f32 %v1774_v56, %v897_v54  ;;  %v1057_v57 = vpop.xlane.xlu2 %1056  ;;  %vm919_vm7 = vweird.f32 %v1774_v56  ;;  %v2208_v0 = vpop.eup %1775 }
0x16cb   :  { %1777 = vrcp.f32 %v1057_v57  ;;  %vm920_vm10 = vmor %vm918_vm8, %vm919_vm7  ;;  %v1059_v7 = vmul.f32 %v2208_v0, %v2199_v46  ;;  %v1084_v13 = vand.u32 2147483648, %v1057_v57  ;;  %v1082_v37 = vand.u32 2147483647, %v1057_v57 }
0x16cc   :  { %v915_v58 = vsub.f32 1.0, %v914_v40  ;;  %1779 = vrcp.f32 %v2183_v6  ;;  %vm1078_vm13 = vweird.f32 %v1057_v57  ;;  %vm1064_vm1 = vweird.f32 %v2208_v0 }
0x16cd   :  { %v1060_v16 = vsub.f32 1.0, %v1059_v7  ;;  %v1085_v11 = vor.u32 1.1754944e-38, %v1084_v13  ;;  %vm1083_vm15 = vcmp.eq.f32.partialorder %v1082_v37, 8.507059e+37  ;;  %vm1065_vm7 = vmor %vm1063_vm5, %vm1064_vm1 }
0x16ce   :  { %v916_v61 = vmul.f32 %v1774_v56, %v915_v58 }
0x16cf   :  { %v1061_v18 = vmul.f32 %v2208_v0, %v1060_v16 }
0x16d0   :  { %v917_v63 = vadd.f32 %v1774_v56, %v916_v61 }
0x16d1   :  { %v1778_v33 = vpop.eup %1777  ;;  %v1062_v32 = vadd.f32 %v2208_v0, %v1061_v18  ;;  %v1843_v18 = vmov 32.0  }
0x16d2   :  { %v921_v3 = vsel %vm920_vm10, %v1774_v56, %v917_v63  ;;  %v1217_v60 = vpop.xlane.xlu1 %1216  ;;  %v1074_v5 = vmul.f32 %v1778_v33, %v1057_v57  ;;  %vm1079_vm12 = vweird.f32 %v1778_v33  ;;  %v1780_v34 = vpop.eup %1779  ;;  %v1230_v56 = vor.u32 1.1754944e-38, %v1229_v21  ;;  %v1334_v63 = vld [vmem:[%s2337_s4 + $0x20] sm:$0xff] }
0x16d3   :  { %v926_v4 = vsel %vm923_vm11, %v925_v2, %v921_v3  ;;  %1781 = vrcp.f32 %v1217_v60  ;;  %vm1080_vm14 = vmor %vm1078_vm13, %vm1079_vm12  ;;  %v1219_v55 = vmul.f32 %v1780_v34, %v2183_v6  ;;  %v1244_v23 = vand.u32 2147483648, %v1217_v60  ;;  %v1332_v2 = vld [vmem:[%s2337_s4 + $0x10] sm:$0xff] }
0x16d4   :  { %v927_v12 = vmul.f32 %v2185_v9, %v926_v4  ;;  %v1075_v8 = vsub.f32 1.0, %v1074_v5  ;;  %v1242_v28 = vand.u32 2147483647, %v1217_v60  ;;  %vm1238_vm3 = vweird.f32 %v1217_v60 }
0x16d5   :  { %v1220_v29 = vsub.f32 1.0, %v1219_v55  ;;  %v1245_v41 = vor.u32 1.1754944e-38, %v1244_v23  ;;  %v1066_v45 = vsel %vm1065_vm7, %v2208_v0, %v1062_v32  ;;  %vm1224_vm10 = vweird.f32 %v1780_v34  ;;  %v1333_v0 = vld [vmem:[%s2337_s4 + $0x18] sm:$0xff] }
0x16d6   :  { %1646 = vmatmul.msk.f32.vlgmr.msrb.gmra.mxu1 %vm658_vm9, %v927_v12  ;;  %v1076_v15 = vmul.f32 %v1778_v33, %v1075_v8  ;;  %vm1243_vm6 = vcmp.eq.f32.partialorder %v1242_v28, 8.507059e+37  ;;  %vm1223_vm11 = vweird.f32 %v2183_v6  ;;  %1783 = vrcp.f32 %v1843_v18 }
0x16d7   :  { %1295 = vmatpush.msrb.mxu1 %v1275_v14  ;;  %v1221_v44 = vmul.f32 %v1780_v34, %v1220_v29  ;;  %vm1225_vm12 = vmor %vm1223_vm11, %vm1224_vm10 }
0x16d8   :  { %v1077_v35 = vadd.f32 %v1778_v33, %v1076_v15 }
0x16d9   :  { %v1782_v17 = vpop.eup %1781  ;;  %v1222_v51 = vadd.f32 %v1780_v34, %v1221_v44  ;;  %v1432_v44 = vld [vmem:[%s2337_s4 + $0x40] sm:$0xff] }
0x16da   :  { %v1234_v10 = vmul.f32 %v1782_v17, %v1217_v60  ;;  %v1081_v9 = vsel %vm1080_vm14, %v1778_v33, %v1077_v35  ;;  %vm1239_vm0 = vweird.f32 %v1782_v17  ;;  %vm1326_vm14 = vcmask 130048  }
0x16db   :  { %v1086_v19 = vsel %vm1083_vm15, %v1085_v11, %v1081_v9  ;;  %v951_v22 = vpop.f32.mrf.mxu0  ;;  %vm1240_vm4 = vmor %vm1238_vm3, %vm1239_vm0  ;;  %v1226_v54 = vsel %vm1225_vm12, %v1780_v34, %v1222_v51  ;;  %vm1329_vm15 = vcmask 195584   ;;  %v1694_v34 = vld [vmem:[%s2337_s4 + $0x1] ss:$0 sm:$0xff] }
0x16dc   :  { %v1235_v20 = vsub.f32 1.0, %v1234_v10  ;;  %1302 = vrot.lane.b32.xlu2 %v951_v22, %s1840_s19  ;;  %v1087_v25 = vmul.f32 %v2189_v38, %v1086_v19  ;;  %v1067_v38 = vand.u32 2147483647, %v2199_v46  ;;  %v1227_v46 = vand.u32 2147483647, %v2183_v6  ;;  %v1784_v19 = vpop.eup %1783 }
0x16de   :  { %v1236_v26 = vmul.f32 %v1782_v17, %v1235_v20  ;;  %1652 = vmatmul.msk.f32.vlgmr.msra.gmra.mxu1 %vm658_vm9, %v1087_v25  ;;  %vm1068_vm8 = vcmp.eq.f32.partialorder %v1067_v38, 8.507059e+37  ;;  %vm1228_vm13 = vcmp.eq.f32.partialorder %v1227_v46, 8.507059e+37  ;;  %v1380_v20 = vmul.f32 32.0, %v1784_v19 }
0x16df   :  { %v1071_v50 = vsel %vm1068_vm8, %v1070_v48, %v1066_v45  ;;  %v1231_v40 = vsel %vm1228_vm13, %v1230_v56, %v1226_v54  ;;  %v1431_v45 = vld [vmem:[%s2337_s4 + $0x38] sm:$0xff] }
0x16e0   :  { %v1237_v36 = vadd.f32 %v1782_v17, %v1236_v26  ;;  %v1072_v53 = vmul.f32 %v2171_v1, %v1071_v50  ;;  %v1232_v57 = vmul.f32 %v2154_v49, %v1231_v40  ;;  %v1335_v49 = vld [vmem:[%s2337_s4 + $0x28] sm:$0xff]  ;;  %v1381_v22 = vsub.f32 1.0, %v1380_v20 }
0x16e1   :  { %1356 = vmatpush.msrb.mxu2 %v1335_v49  ;;  %v1696_v49 = vld [vmem:[%s2337_s4 + $0x3] ss:$0 sm:$0xff] }
0x16e2   :  { %v1241_v42 = vsel %vm1240_vm4, %v1782_v17, %v1237_v36  ;;  %v1382_v23 = vmul.f32 %v1784_v19, %v1381_v22 }
0x16e3   :  { %v1246_v43 = vsel %vm1243_vm6, %v1245_v41, %v1241_v42  ;;  %1357 = vmatpush.msrb.mxu2 %v1334_v63 }
0x16e4   :  { %v1247_v47 = vmul.f32 %v2193_v24, %v1246_v43  ;;  %v1249_v24 = vpop.permute.xlu2 %1248  ;;  %v1383_v25 = vadd.f32 %v1784_v19, %v1382_v23  ;;  %v1433_v43 = vld [vmem:[%s2337_s4 + $0x48] sm:$0xff] }
0x16e5   :  { %1358 = vmatpush.msrb.mxu2 %v1333_v0  ;;  %1454 = vmatpush.msrb.mxu3 %v1433_v43 }
0x16e6   :  { %1658 = vmatmul.msk.f32.vlgmr.msrb.gmra.mxu1 %vm658_vm9, %v1247_v47  ;;  %v1430_v47 = vld [vmem:[%s2337_s4 + $0x30] sm:$0xff] }
0x16e7   :  { %1359 = vmatpush.msrb.mxu2 %v1332_v2  ;;  %1455 = vmatpush.msrb.mxu3 %v1432_v44 }
0x16e9   :  { %1456 = vmatpush.msrb.mxu3 %v1431_v45 }
0x16ea   :  { %v1089_v52 = vpop.permute.xlu1 %1088 }
0x16eb   :  { %1109 = vmatpush.msra.mxu0 %v1089_v52  ;;  %1457 = vmatpush.msrb.mxu3 %v1430_v47 }
0x16ec   :  { %1651 = vmatmul.msk.f32.vlgmr.msra.gmra.mxu0 %vm658_vm9, %v1072_v53  ;;  %v817_v58 = vpop.f32.mrf.mxu1 }
0x16ed   :  { %1269 = vmatpush.msrb.mxu0 %v1249_v24 }
0x16f4   :  { %1657 = vmatmul.msk.f32.vlgmr.msrb.gmra.mxu0 %vm658_vm9, %v1232_v57 }
0x1736   :  { %v1303_v3 = vpop.permute.xlu2 %1302 }
0x1737   :  { %v1324_v60 = vsel %vm658_vm9, %v2149_v27, %v1303_v3 }
0x1753   :  { %v977_v59 = vpop.f32.mrf.mxu1 }
0x1754   :  { %1304 = vrot.lane.b32.xlu2 %v977_v59, %s1840_s19 }
0x175b   :  { %v1137_v1 = vpop.f32.mrf.mxu1 }
0x1763   :  { %v1297_v62 = vpop.f32.mrf.mxu1 }
0x1769   :  { %v1111_v6 = vpop.f32.mrf.mxu0 }
0x176a   :  { %1310 = vrot.lane.b32.xlu0 %v1111_v6, %s1841_s20  ;;  %v1695_v6 = vld [vmem:[%s2337_s4 + $0x2] ss:$0 sm:$0xff] }
0x1771   :  { %v1271_v61 = vpop.f32.mrf.mxu0 }
0x1772   :  { %1318 = vrot.lane.b32.xlu1 %v1271_v61, %s1842_s21  ;;  %1312 = vrot.lane.b32.xlu0 %v1137_v1, %s1841_s20 }
0x177a   :  { %1320 = vrot.lane.b32.xlu1 %v1297_v62, %s1842_s21 }
0x17ae   :  { %v1305_v12 = vpop.permute.xlu2 %1304 }
0x17af   :  { %v1325_v14 = vsel %vm658_vm9, %v817_v58, %v1305_v12  ;;  %vm1384_vm9 = vweird.f32 %v1784_v19  ;;  %v1486_v12 = vld [vmem:[%s2337_s4 + $0x68] sm:$0xff] }
0x17b0   :  { %v2260_v26 = vsel %vm1384_vm9, %v1784_v19, %v1383_v25  ;;  %1507 = vmatpush.msra.mxu0 %v1486_v12  ;;  %v1700_v12 = vld [vmem:[%s2337_s4 + $0x7] ss:$0 sm:$0xff] }
0x17dc   :  { %v1311_v33 = vpop.permute.xlu0 %1310 }
0x17dd   :  { %v1327_v4 = vsel %vm1326_vm14, %v1324_v60, %v1311_v33 }
0x17e4   :  { %v1319_v5 = vpop.permute.xlu1 %1318  ;;  %v1313_v8 = vpop.permute.xlu0 %1312 }
0x17e5   :  { %v1330_v7 = vsel %vm1329_vm15, %v1327_v4, %v1319_v5  ;;  %v1328_v13 = vsel %vm1326_vm14, %v1325_v14, %v1313_v8  ;;  %v1485_v8 = vld [vmem:[%s2337_s4 + $0x60] sm:$0xff]  ;;  %v1484_v14 = vld [vmem:[%s2337_s4 + $0x58] sm:$0xff]  ;;  %vm1603_vm14 = vcmask 58368  }
0x17e6   :  { %1659 = vmatmul.msk.f32.vlgmr.msrb.gmra.mxu2 %vm76_vm2, %v1330_v7  ;;  %1508 = vmatpush.msra.mxu0 %v1485_v8 }
0x17e8   :  { %1509 = vmatpush.msra.mxu0 %v1484_v14 }
0x17ec   :  { %v1321_v15 = vpop.permute.xlu1 %1320 }
0x17ed   :  { %v1331_v37 = vsel %vm1329_vm15, %v1328_v13, %v1321_v15  ;;  %v1483_v13 = vld [vmem:[%s2337_s4 + $0x50] sm:$0xff]  ;;  %v1697_v15 = vld [vmem:[%s2337_s4 + $0x4] ss:$0 sm:$0xff] }
0x17ee   :  { %1660 = vmatmul.msk.f32.gmra.mxu2 %vm76_vm2, %v1331_v37  ;;  %1510 = vmatpush.msra.mxu0 %v1483_v13  ;;  %v1701_v13 = vld [vmem:[%s2337_s4 + $0x8] ss:$0 sm:$0xff] }
0x1869   :  { %v1361_v16 = vpop.f32.mrf.mxu2 }
0x186a   :  { %v1362_v27 = vadd.f32 %v1694_v34, %v1361_v16 }
0x186c   :  { %v1369_v17 = vadd.f32 %v1362_v27, %v2068_v30 }
0x186e   :  { %v1373_v35 = vsel %vm76_vm2, %v1369_v17, 0.0 }
0x186f   :  { %1374 = vadd.xlane.f32.xlu2 %v1373_v35 }
0x1871   :  { %v1364_v11 = vpop.f32.mrf.mxu2 }
0x1872   :  { %v1365_v10 = vadd.f32 %v1694_v34, %v1364_v11 }
0x1874   :  { %v1370_v55 = vadd.f32 %v1365_v10, %v2072_v31 }
0x1876   :  { %v1376_v9 = vsel %vm76_vm2, %v1370_v55, 0.0 }
0x1877   :  { %1377 = vadd.xlane.f32.xlu0 %v1376_v9 }
0x18e2   :  { %v1375_v30 = vpop.xlane.xlu2 %1374 }
0x18e3   :  { %v1386_v28 = vmul.f32 %v2260_v26, %v1375_v30 }
0x18e5   :  { %v1388_v29 = vsub.f32 %v1369_v17, %v1386_v28 }
0x18e7   :  { %v1390_v32 = vmul.f32 %v1388_v29, %v1388_v29 }
0x18e9   :  { %v1392_v31 = vsel %vm76_vm2, %v1390_v32, 0.0 }
0x18ea   :  { %1393 = vadd.xlane.f32.xlu1 %v1392_v31  ;;  %v1378_v36 = vpop.xlane.xlu0 %1377 }
0x18eb   :  { %v1387_v39 = vmul.f32 %v2260_v26, %v1378_v36 }
0x18ed   :  { %v1389_v41 = vsub.f32 %v1370_v55, %v1387_v39  ;;  %v1698_v39 = vld [vmem:[%s2337_s4 + $0x5] ss:$0 sm:$0xff] }
0x18ef   :  { %v1391_v38 = vmul.f32 %v1389_v41, %v1389_v41 }
0x18f1   :  { %v1395_v42 = vsel %vm76_vm2, %v1391_v38, 0.0 }
0x18f2   :  { %1396 = vadd.xlane.f32.xlu2 %v1395_v42 }
0x195d   :  { %v1394_v48 = vpop.xlane.xlu1 %1393 }
0x195e   :  { %v1398_v50 = vmul.f32 %v1394_v48, %v2260_v26 }
0x1960   :  { %v1400_v51 = vadd.f32 1e-12, %v1398_v50 }
0x1962   :  { %1785 = vrsqrt.f32 %v1400_v51  ;;  %vm1408_vm1 = vweird.f32 %v1400_v51 }
0x1965   :  { %v1397_v21 = vpop.xlane.xlu2 %1396 }
0x1966   :  { %v1399_v46 = vmul.f32 %v1397_v21, %v2260_v26 }
0x1968   :  { %v1786_v52 = vpop.eup %1785  ;;  %v1401_v53 = vadd.f32 1e-12, %v1399_v46 }
0x1969   :  { %v1403_v54 = vmul.f32 %v1786_v52, %v1400_v51  ;;  %vm1409_vm0 = vweird.f32 %v1786_v52 }
0x196a   :  { %1787 = vrsqrt.f32 %v1401_v53  ;;  %vm1410_vm3 = vmor %vm1408_vm1, %vm1409_vm0  ;;  %vm1418_vm5 = vweird.f32 %v1401_v53 }
0x196b   :  { %v1404_v24 = vmul.f32 %v1786_v52, %v1403_v54 }
0x196d   :  { %v1405_v56 = vmul.f32 0.5, %v1404_v24 }
0x196f   :  { %v1406_v40 = vsub.f32 1.5, %v1405_v56 }
0x1970   :  { %v1788_v57 = vpop.eup %1787 }
0x1971   :  { %v1407_v58 = vmul.f32 %v1786_v52, %v1406_v40  ;;  %v1413_v59 = vmul.f32 %v1788_v57, %v1401_v53  ;;  %vm1419_vm4 = vweird.f32 %v1788_v57 }
0x1972   :  { %vm1420_vm6 = vmor %vm1418_vm5, %vm1419_vm4 }
0x1973   :  { %v1411_v1 = vsel %vm1410_vm3, %v1786_v52, %v1407_v58  ;;  %v1414_v61 = vmul.f32 %v1788_v57, %v1413_v59 }
0x1974   :  { %v1422_v62 = vmul.f32 %v1411_v1, %v1388_v29 }
0x1975   :  { %v1415_v63 = vmul.f32 0.5, %v1414_v61 }
0x1976   :  { %v1425_v0 = vmul.f32 %v1695_v6, %v1422_v62 }
0x1977   :  { %v1416_v2 = vsub.f32 1.5, %v1415_v63 }
0x1978   :  { %v1428_v33 = vadd.f32 %v1696_v49, %v1425_v0 }
0x1979   :  { %v1417_v3 = vmul.f32 %v1788_v57, %v1416_v2 }
0x197a   :  { %1661 = vmatmul.msk.f32.vlgmr.msrb.gmra.mxu3 %vm76_vm2, %v1428_v33 }
0x197b   :  { %v1421_v60 = vsel %vm1420_vm6, %v1788_v57, %v1417_v3 }
0x197c   :  { %v1423_v4 = vmul.f32 %v1421_v60, %v1389_v41 }
0x197e   :  { %v1426_v5 = vmul.f32 %v1695_v6, %v1423_v4  ;;  %v1699_v4 = vld [vmem:[%s2337_s4 + $0x6] ss:$0 sm:$0xff] }
0x1980   :  { %v1429_v7 = vadd.f32 %v1696_v49, %v1426_v5 }
0x1982   :  { %1662 = vmatmul.msk.f32.gmra.mxu3 %vm76_vm2, %v1429_v7 }
0x19fd   :  { %v1459_v37 = vpop.f32.mrf.mxu3 }
0x19fe   :  { %v1460_v34 = vadd.f32 %v1697_v15, %v1459_v37 }
0x1a00   :  { %v1465_v16 = vmul.f32 %v1460_v34, %v1460_v34 }
0x1a02   :  { %v1467_v27 = vmul.f32 %v1465_v16, %v1460_v34 }
0x1a04   :  { %v1469_v17 = vmul.f32 0.044715, %v1467_v27 }
0x1a05   :  { %v1462_v35 = vpop.f32.mrf.mxu3 }
0x1a06   :  { %v1471_v11 = vadd.f32 %v1469_v17, %v1460_v34  ;;  %v1463_v10 = vadd.f32 %v1697_v15, %v1462_v35 }
0x1a08   :  { %v1473_v55 = vmul.f32 0.7978846, %v1471_v11  ;;  %v1466_v9 = vmul.f32 %v1463_v10, %v1463_v10 }
0x1a0a   :  { %1789 = vtanh.f32 %v1473_v55  ;;  %v1468_v18 = vmul.f32 %v1466_v9, %v1463_v10 }
0x1a0c   :  { %v1470_v19 = vmul.f32 0.044715, %v1468_v18 }
0x1a0e   :  { %v1472_v20 = vadd.f32 %v1470_v19, %v1463_v10 }
0x1a10   :  { %v1790_v22 = vpop.eup %1789  ;;  %v1474_v23 = vmul.f32 0.7978846, %v1472_v20 }
0x1a11   :  { %v1477_v25 = vadd.f32 1.0, %v1790_v22 }
0x1a12   :  { %1791 = vtanh.f32 %v1474_v23 }
0x1a13   :  { %v1479_v30 = vmul.f32 0.5, %v1477_v25 }
0x1a15   :  { %v1481_v28 = vmul.f32 %v1479_v30, %v1460_v34  ;;  %v1702_v34 = vld [vmem:[%s2337_s4 + $0x9] ss:$0 sm:$0xff]  ;;  %s1844_s4 = smov [#allocation2]  }
0x1a16   :  { %s1610_s8 = sshll.u32 %s1844_s4, 4  ;;  %s1611_s8 = int_to_ptr.vmem [resolvable:$true] %s1610_s8 }
0x1a17   :  { %1663 = vmatmul.msk.f32.vlgmr.msra.gmra.mxu0 %vm76_vm2, %v1481_v28 }
0x1a18   :  { %v1792_v29 = vpop.eup %1791 }
0x1a19   :  { %v1478_v32 = vadd.f32 1.0, %v1792_v29  ;;  %v1596_v29 = vlaneseq }
0x1a1b   :  { %v1480_v31 = vmul.f32 0.5, %v1478_v32 }
0x1a1d   :  { %v1482_v36 = vmul.f32 %v1480_v31, %v1463_v10 }
0x1a1f   :  { %1664 = vmatmul.msk.f32.gmra.mxu0 %vm76_vm2, %v1482_v36  ;;  %v1597_v36 = vand.u32 127, %v1596_v29 }
0x1a94   :  { %v1512_v41 = vpop.f32.mrf.mxu0 }
0x1a95   :  { %v1513_v38 = vadd.f32 %v1698_v39, %v1512_v41 }
0x1a97   :  { %v1518_v42 = vadd.f32 %v1513_v38, %v1428_v33 }
0x1a99   :  { %v1522_v43 = vsel %vm76_vm2, %v1518_v42, 0.0 }
0x1a9a   :  { %1523 = vadd.xlane.f32.xlu0 %v1522_v43 }
0x1a9c   :  { %v1515_v44 = vpop.f32.mrf.mxu0 }
0x1a9d   :  { %v1516_v45 = vadd.f32 %v1698_v39, %v1515_v44 }
0x1a9f   :  { %v1519_v47 = vadd.f32 %v1516_v45, %v1429_v7 }
0x1aa1   :  { %v1525_v48 = vsel %vm76_vm2, %v1519_v47, 0.0 }
0x1aa2   :  { %1526 = vadd.xlane.f32.xlu1 %v1525_v48 }
0x1b0d   :  { %v1524_v50 = vpop.xlane.xlu0 %1523 }
0x1b0e   :  { %v1528_v51 = vmul.f32 %v1524_v50, %v2260_v26 }
0x1b10   :  { %v1530_v21 = vsub.f32 %v1518_v42, %v1528_v51 }
0x1b12   :  { %v1532_v46 = vmul.f32 %v1530_v21, %v1530_v21 }
0x1b14   :  { %v1534_v52 = vsel %vm76_vm2, %v1532_v46, 0.0 }
0x1b15   :  { %v1527_v53 = vpop.xlane.xlu1 %1526  ;;  %1535 = vadd.xlane.f32.xlu2 %v1534_v52 }
0x1b16   :  { %v1529_v54 = vmul.f32 %v1527_v53, %v2260_v26 }
0x1b18   :  { %v1531_v24 = vsub.f32 %v1519_v47, %v1529_v54 }
0x1b1a   :  { %v1533_v56 = vmul.f32 %v1531_v24, %v1531_v24 }
0x1b1c   :  { %v1537_v40 = vsel %vm76_vm2, %v1533_v56, 0.0 }
0x1b1d   :  { %1538 = vadd.xlane.f32.xlu0 %v1537_v40 }
0x1b88   :  { %v1536_v57 = vpop.xlane.xlu2 %1535 }
0x1b89   :  { %v1540_v58 = vmul.f32 %v1536_v57, %v2260_v26 }
0x1b8b   :  { %v1542_v59 = vadd.f32 1e-12, %v1540_v58 }
0x1b8d   :  { %1793 = vrsqrt.f32 %v1542_v59  ;;  %vm1550_vm8 = vweird.f32 %v1542_v59 }
0x1b90   :  { %v1539_v6 = vpop.xlane.xlu0 %1538 }
0x1b91   :  { %v1541_v1 = vmul.f32 %v1539_v6, %v2260_v26 }
0x1b93   :  { %v1794_v61 = vpop.eup %1793  ;;  %v1543_v62 = vadd.f32 1e-12, %v1541_v1 }
0x1b94   :  { %v1545_v49 = vmul.f32 %v1794_v61, %v1542_v59  ;;  %vm1551_vm7 = vweird.f32 %v1794_v61 }
0x1b95   :  { %1795 = vrsqrt.f32 %v1543_v62  ;;  %vm1552_vm10 = vmor %vm1550_vm8, %vm1551_vm7  ;;  %vm1560_vm12 = vweird.f32 %v1543_v62 }
0x1b96   :  { %v1546_v63 = vmul.f32 %v1794_v61, %v1545_v49 }
0x1b98   :  { %v1547_v0 = vmul.f32 0.5, %v1546_v63 }
0x1b9a   :  { %v1548_v2 = vsub.f32 1.5, %v1547_v0 }
0x1b9b   :  { %v1796_v33 = vpop.eup %1795 }
0x1b9c   :  { %v1549_v3 = vmul.f32 %v1794_v61, %v1548_v2  ;;  %v1555_v60 = vmul.f32 %v1796_v33, %v1543_v62  ;;  %vm1561_vm11 = vweird.f32 %v1796_v33 }
0x1b9d   :  { %vm1562_vm13 = vmor %vm1560_vm12, %vm1561_vm11 }
0x1b9e   :  { %v1553_v5 = vsel %vm1552_vm10, %v1794_v61, %v1549_v3  ;;  %v1556_v7 = vmul.f32 %v1796_v33, %v1555_v60 }
0x1b9f   :  { %v1564_v26 = vmul.f32 %v1553_v5, %v1530_v21 }
0x1ba0   :  { %v1557_v8 = vmul.f32 0.5, %v1556_v7 }
0x1ba1   :  { %v1567_v14 = vmul.f32 %v1699_v4, %v1564_v26 }
0x1ba2   :  { %v1558_v15 = vsub.f32 1.5, %v1557_v8 }
0x1ba3   :  { %v1570_v37 = vadd.f32 %v1700_v12, %v1567_v14 }
0x1ba4   :  { %v1559_v16 = vmul.f32 %v1796_v33, %v1558_v15 }
0x1ba5   :  { %v1575_v27 = vmul.f32 %v1701_v13, %v1570_v37 }
0x1ba6   :  { %v1563_v17 = vsel %vm1562_vm13, %v1796_v33, %v1559_v16 }
0x1ba7   :  { %v1565_v35 = vmul.f32 %v1563_v17, %v1531_v24  ;;  %v1578_v11 = vadd.f32 %v1702_v34, %v1575_v27 }
0x1ba9   :  { %v1580_v10 = vsel %vm76_vm2, %v1578_v11, 0.0  ;;  %v1568_v55 = vmul.f32 %v1699_v4, %v1565_v35 }
0x1baa   :  { %1581 = vadd.xlane.f32.xlu1 %v1580_v10 }
0x1bab   :  { %v1571_v9 = vadd.f32 %v1700_v12, %v1568_v55 }
0x1bad   :  { %v1576_v18 = vmul.f32 %v1701_v13, %v1571_v9 }
0x1baf   :  { %v1579_v19 = vadd.f32 %v1702_v34, %v1576_v18 }
0x1bb1   :  { %v1583_v20 = vsel %vm76_vm2, %v1579_v19, 0.0  ;;  %vm1600_vm2 = vcmask 1041409  }
0x1bb2   :  { %1584 = vadd.xlane.f32.xlu2 %v1583_v20 }
0x1c1d   :  { %v1582_v22 = vpop.xlane.xlu1 %1581 }
0x1c1e   :  { %v1586_v23 = vmul.f32 0.5, %v1582_v22 }
0x1c20   :  { %1797 = vtanh.f32 %v1586_v23 }
0x1c25   :  { %v1585_v25 = vpop.xlane.xlu2 %1584 }
0x1c26   :  { %v1587_v30 = vmul.f32 0.5, %v1585_v25  ;;  %v1798_v28 = vpop.eup %1797 }
0x1c27   :  { %v1590_v32 = vadd.f32 1.0, %v1798_v28 }
0x1c28   :  { %1799 = vtanh.f32 %v1587_v30 }
0x1c29   :  { %v1592_v39 = vmul.f32 0.5, %v1590_v32 }
0x1c2b   :  { %v1598_v42 = vperm.slane %v1592_v39, %v1597_v36 }
0x1c2e   :  { %v1800_v31 = vpop.eup %1799 }
0x1c2f   :  { %v1591_v41 = vadd.f32 1.0, %v1800_v31 }
0x1c31   :  { %v1593_v38 = vmul.f32 0.5, %v1591_v41 }
0x1c33   :  { %v1599_v43 = vperm.slane %v1593_v38, %v1597_v36 }
0x1c35   :  { %v1601_v44 = vsel %vm1600_vm2, %v1599_v43, %v1598_v42 }
0x1c36   :  { %1604 = vst.msk [vmem:[#allocation2] sm:$0x3] %vm1603_vm14, %v1601_v44 }
0x1c37   :  { %1615 = dma.vmem_to_hbm [thread:$0]  %s1611_s8, 32, %s1613_s10, [#allocation3]  }
0x1c38   :  { %1825 = dma.done.wait [#allocation3], 32  }
0x1c39   :  { %1826 = vsyncadd [#allocation3], 4294967264 }
0x1c3a   :  { %1620 = vsyncpa [#allocation3], 1 }

</bundles_post_ra>
